<compile_context>
chip_gen: v7x
topology: tpu7x:2x2x1
jax: 0.10.0
libtpu: 0.0.40
codegen_flags: <defaults>
</compile_context>

<pallas_src>
import math

import numpy as np

import jax
import jax.numpy as jnp
from jax import lax
from jax.experimental import pallas as pl
from jax.experimental.pallas import tpu as pltpu


# ----------------------------------------------------------------------------
# Fused kernel: input projection -> fused bi-GRU recurrence -> MLP -> sigmoid
# ----------------------------------------------------------------------------
def _make_disc_kernel(T, Bp, Hg, eps=1e-5):
    threeHg = 3 * Hg

    def kernel(x_ref, wih_f_ref, wih_b_ref, bpre_f_ref, bpre_b_ref,
               whh_f_ref, whh_b_ref, bhhn_f_ref, bhhn_b_ref,
               s_lo_ref, s_hi_ref,
               w1t_ref, w1b_ref, b1_ref, g1_ref, be1_ref,
               w2_ref, b2_ref, g2_ref, be2_ref,
               w3_ref, b3_ref,
               out_ref,
               gi_f_sc, gi_b_sc):
        f32 = jnp.float32

        # ---- 1) Pre-pass: per-direction input projections, written straight
        #         into their scratches (no 6H intermediate, no copy pass). ----
        x = x_ref[...]                                             # (T*Bp, I)
        gi_f = jnp.dot(x, wih_f_ref[...],
                       preferred_element_type=f32) + bpre_f_ref[...]
        gi_f_sc[...] = gi_f.astype(gi_f_sc.dtype)                  # (T*Bp, 3Hg)
        gi_b = jnp.dot(x, wih_b_ref[...],
                       preferred_element_type=f32) + bpre_b_ref[...]
        gi_b_sc[...] = gi_b.astype(gi_b_sc.dtype)

        # ---- 2) Single fused recurrence over T: both directions per step ----
        whh_f = whh_f_ref[...]                                     # (Hg, 3Hg)
        whh_b = whh_b_ref[...]
        mxu_dt = whh_f.dtype
        # Hoisted broadcasts (n-gate hidden bias only; r/z folded in pre-pass).
        bhhn_f = jnp.broadcast_to(bhhn_f_ref[...], (Bp, Hg))
        bhhn_b = jnp.broadcast_to(bhhn_b_ref[...], (Bp, Hg))

        def gru_cell(h, gi, whh, bhhn):
            gh = jnp.dot(h.astype(mxu_dt), whh, preferred_element_type=f32)
            r = jax.nn.sigmoid(gi[:, 0:Hg] + gh[:, 0:Hg])          # vreg-aligned
            z = jax.nn.sigmoid(gi[:, Hg:2 * Hg] + gh[:, Hg:2 * Hg])
            n = jnp.tanh(gi[:, 2 * Hg:] + r * (gh[:, 2 * Hg:] + bhhn))
            return n + z * (h - n)                                 # == (1-z)*n + z*h

        def step(t, carry):
            h_f, h_b = carry
            sf = pl.multiple_of(t * Bp, Bp)
            sb = pl.multiple_of((T - 1 - t) * Bp, Bp)
            gi_f_t = gi_f_sc[pl.ds(sf, Bp), :].astype(f32)         # (Bp, 3Hg)
            gi_b_t = gi_b_sc[pl.ds(sb, Bp), :].astype(f32)
            return (gru_cell(h_f, gi_f_t, whh_f, bhhn_f),
                    gru_cell(h_b, gi_b_t, whh_b, bhhn_b))

        h0 = jnp.zeros((Bp, Hg), f32)
        h_f, h_b = lax.fori_loop(0, T, step, (h0, h0))             # (Bp, Hg) each

        # ---- 3) h_n.view(batch, -1) via selection matmuls (bulk, no per-row
        #         stores; padded batch rows are zeroed out by S's columns). ----
        h_stack = jnp.concatenate([h_f, h_b], axis=0)              # (2Bp, Hg)
        hcat_lo = jnp.dot(s_lo_ref[...], h_stack, preferred_element_type=f32)
        hcat_hi = jnp.dot(s_hi_ref[...], h_stack, preferred_element_type=f32)

        # ---- 4) Fused MLP head ----
        def layernorm(v, g, b):
            mu = jnp.mean(v, axis=-1, keepdims=True)
            var = jnp.mean((v - mu) ** 2, axis=-1, keepdims=True)
            return (v - mu) * lax.rsqrt(var + eps) * g + b

        # Layer 1 decomposed over the two halves of the torch "view":
        a1 = (jnp.dot(hcat_lo, w1t_ref[...], preferred_element_type=f32)
              + jnp.dot(hcat_hi, w1b_ref[...], preferred_element_type=f32)
              + b1_ref[...])
        # TODO(synk): nn.Dropout is inference-mode identity (no PRNG mask).
        a1 = layernorm(jnp.maximum(a1, 0.0), g1_ref[...], be1_ref[...])
        a2 = jnp.dot(a1, w2_ref[...], preferred_element_type=f32) + b2_ref[...]
        a2 = layernorm(jnp.maximum(a2, 0.0), g2_ref[...], be2_ref[...])
        # Final Linear(L, 1): VPU multiply + lane reduction (no 1-col matmul).
        logits = jnp.sum(a2 * w3_ref[...], axis=-1, keepdims=True) + b3_ref[...]
        out_ref[...] = jax.nn.sigmoid(logits)                      # (Bp, 1)

    return kernel


# ----------------------------------------------------------------------------
# Wrapper: layout / padding / weight packing + pallas_call
# ----------------------------------------------------------------------------
def discriminator_forward(x, params, *, use_bf16=False):
    """x: (B, T, input_size) float32; returns sigmoid scores (B, 1) float32."""
    B, T, I = x.shape
    H = params["w_hh"].shape[-2]
    L = params["w1"].shape[-1]
    f32 = jnp.float32

    Hg = ((H + 127) // 128) * 128          # lane-padded per-gate width
    Bp = max(8, ((B + 7) // 8) * 8)        # sublane-padded batch

    mxu_dt = jnp.bfloat16 if use_bf16 else f32   # MXU operand dtype (v6e/v7x win)
    gi_dt = jnp.bfloat16 if use_bf16 else f32    # gi scratch dtype (VMEM saver)

    # Batch-pad + time-major flatten: row index = t*Bp + b (aligned Bp blocks).
    x_p = jnp.pad(x, ((0, Bp - B), (0, 0), (0, 0)))
    x_tm = jnp.transpose(x_p, (1, 0, 2)).reshape(T * Bp, I).astype(mxu_dt)

    wih, whh, bih, bhh = params["w_ih"], params["w_hh"], params["b_ih"], params["b_hh"]

    def pack_cols(w, rows_out=None):
        # (In, 3H) -> (rows_out or In, 3Hg); gate g at columns [g*Hg, g*Hg+H).
        In = w.shape[0]
        R = In if rows_out is None else rows_out
        out = jnp.zeros((R, 3 * Hg), f32)
        for g in range(3):
            out = out.at[:In, g * Hg:g * Hg + H].set(w[:, g * H:(g + 1) * H])
        return out

    def prepack(d):
        wih_p = pack_cols(wih[d]).astype(mxu_dt)                 # (I, 3Hg)
        whh_p = pack_cols(whh[d], rows_out=Hg).astype(mxu_dt)    # (Hg, 3Hg)
        # Fold b_hh into the pre-pass bias for r and z gates only.
        b_rz = bih[d][:, :2 * H] + bhh[d][:, :2 * H]
        b_n = bih[d][:, 2 * H:]
        bpre = pack_cols(jnp.concatenate([b_rz, b_n], axis=-1))  # (1, 3Hg)
        bhhn = jnp.zeros((1, Hg), f32).at[:, :H].set(bhh[d][:, 2 * H:])
        return wih_p, whh_p, bpre, bhhn

    wih_f, whh_f, bpre_f, bhhn_f = prepack(0)
    wih_b, whh_b, bpre_b, bhhn_b = prepack(1)

    # Selection matrices reproducing PyTorch h_n.view(batch, -1):
    # view row r = [h_n[(2r)//B, (2r)%B, :], h_n[(2r+1)//B, (2r+1)%B, :]],
    # with h_stack rows = [h_fwd(0..Bp-1), h_bwd(0..Bp-1)].
    s_lo_np = np.zeros((Bp, 2 * Bp), np.float32)
    s_hi_np = np.zeros((Bp, 2 * Bp), np.float32)
    for r in range(B):
        for k, s in ((2 * r, s_lo_np), (2 * r + 1, s_hi_np)):
            d, b = k // B, k % B
            s[r, d * Bp + b] = 1.0
    s_lo = jnp.asarray(s_lo_np)
    s_hi = jnp.asarray(s_hi_np)

    # Layer-1 weight split into the two "view" halves, rows padded to Hg.
    w1t = jnp.zeros((Hg, L), f32).at[:H].set(params["w1"][:H])
    w1b = jnp.zeros((Hg, L), f32).at[:H].set(params["w1"][H:])

    kernel = _make_disc_kernel(T, Bp, Hg)
    vmem = pl.BlockSpec(memory_space=pltpu.MemorySpace.VMEM)

    # VMEM limit derived from the actual footprint (gi scratches dominate).
    gi_bytes = 2 * T * Bp * 3 * Hg * jnp.dtype(gi_dt).itemsize
    x_bytes = T * Bp * I * jnp.dtype(mxu_dt).itemsize
    vmem_limit = int(min(100 << 20, max(16 << 20, 2 * (gi_bytes + x_bytes) + (4 << 20))))

    out = pl.pallas_call(
        kernel,
        out_shape=jax.ShapeDtypeStruct((Bp, 1), f32),
        in_specs=[vmem] * 22,
        out_specs=vmem,
        scratch_shapes=[
            pltpu.VMEM((T * Bp, 3 * Hg), gi_dt),   # fwd input-proj gates
            pltpu.VMEM((T * Bp, 3 * Hg), gi_dt),   # bwd input-proj gates
        ],
        compiler_params=pltpu.CompilerParams(vmem_limit_bytes=vmem_limit),
    )(x_tm, wih_f, wih_b, bpre_f, bpre_b, whh_f, whh_b, bhhn_f, bhhn_b,
      s_lo, s_hi, w1t, w1b, params["b1"], params["g1"], params["be1"],
      params["w2"], params["b2"], params["g2"], params["be2"],
      params["w3"], params["b3"])
    return out[:B]


# ----------------------------------------------------------------------------
# Deterministic parameter initialization (PyTorch shapes, pre-transposed)
# ----------------------------------------------------------------------------
def init_params(key, input_size, hidden_size, linear_size):
    I, H, L = input_size, hidden_size, linear_size
    ks = jax.random.split(key, 12)
    sg = 1.0 / math.sqrt(H)

    def u(k, shape, scale):
        return jax.random.uniform(k, shape, jnp.float32, -scale, scale)

    return {
        # GRU (dir 0 = forward, dir 1 = reverse); weights stored (in, out),
        # gate order [r, z, n] as in PyTorch.
        "w_ih": u(ks[0], (2, I, 3 * H), sg),
        "w_hh": u(ks[1], (2, H, 3 * H), sg),
        "b_ih": u(ks[2], (2, 1, 3 * H), sg),
        "b_hh": u(ks[3], (2, 1, 3 * H), sg),
        # Linear(2H, L) + LayerNorm(L)
        "w1": u(ks[4], (2 * H, L), 1.0 / math.sqrt(2 * H)),
        "b1": u(ks[5], (1, L), 1.0 / math.sqrt(2 * H)),
        "g1": jnp.ones((1, L), jnp.float32),
        "be1": jnp.zeros((1, L), jnp.float32),
        # Linear(L, L) + LayerNorm(L)
        "w2": u(ks[6], (L, L), 1.0 / math.sqrt(L)),
        "b2": u(ks[7], (1, L), 1.0 / math.sqrt(L)),
        "g2": jnp.ones((1, L), jnp.float32),
        "be2": jnp.zeros((1, L), jnp.float32),
        # Linear(L, 1) stored as a row vector (1, L)
        "w3": u(ks[8], (1, L), 1.0 / math.sqrt(L)),
        "b3": u(ks[9], (1, 1), 1.0 / math.sqrt(L)),
    }


# ----------------------------------------------------------------------------
# Pure-JAX reference (mirrors PyTorch semantics) for correctness checking
# ----------------------------------------------------------------------------
def reference_forward(x, params):
    B, T, I = x.shape
    H = params["w_hh"].shape[-2]

    def run_dir(d, reverse):
        h = jnp.zeros((B, H), jnp.float32)
        order = range(T - 1, -1, -1) if reverse else range(T)
        for t in order:
            gi = x[:, t, :] @ params["w_ih"][d] + params["b_ih"][d]
            gh = h @ params["w_hh"][d] + params["b_hh"][d]
            r = jax.nn.sigmoid(gi[:, 0:H] + gh[:, 0:H])
            z = jax.nn.sigmoid(gi[:, H:2 * H] + gh[:, H:2 * H])
            n = jnp.tanh(gi[:, 2 * H:3 * H] + r * gh[:, 2 * H:3 * H])
            h = (1.0 - z) * n + z * h
        return h

    hn = jnp.stack([run_dir(0, False), run_dir(1, True)], axis=0)  # (2, B, H)
    h_cat = hn.reshape(B, 2 * H)   # == PyTorch h_n.view(batch, -1)

    def ln(v, g, b):
        mu = jnp.mean(v, axis=-1, keepdims=True)
        var = jnp.mean((v - mu) ** 2, axis=-1, keepdims=True)
        return (v - mu) * lax.rsqrt(var + 1e-5) * g + b

    a1 = ln(jnp.maximum(h_cat @ params["w1"] + params["b1"], 0.0),
            params["g1"], params["be1"])
    a2 = ln(jnp.maximum(a1 @ params["w2"] + params["b2"], 0.0),
            params["g2"], params["be2"])
    return jax.nn.sigmoid(a2 @ params["w3"].T + params["b3"])


if __name__ == "__main__":
    # Shapes consistent with the module's forward: hidden_states (B, T, input).
    B, T = 2, 8
    input_size, hidden_size, linear_size = 16, 32, 64

    key = jax.random.PRNGKey(0)
    k_x, k_p = jax.random.split(key)
    x = jax.random.normal(k_x, (B, T, input_size), jnp.float32)
    params = init_params(k_p, input_size, hidden_size, linear_size)

    ref = reference_forward(x, params)

    # f32 path: exact-semantics check.
    scores = jax.block_until_ready(discriminator_forward(x, params))
    assert scores.shape == (B, 1)
    assert jnp.allclose(scores, ref, atol=1e-4, rtol=1e-4), (scores, ref)

    # bf16 MXU-operand path (v6e/v7x): looser tolerance vs the f32 reference.
    scores_bf16 = jax.block_until_ready(
        discriminator_forward(x, params, use_bf16=True))
    assert scores_bf16.shape == (B, 1)
    assert jnp.allclose(scores_bf16, ref, atol=5e-2), (scores_bf16, ref)

    print("KERNEL_OK")
</pallas_src>

<mosaic_0001>
module attributes {stable_mosaic.version = 11 : i64} {
  func.func @kernel(%arg0: memref<64x16xf32, #tpu.memory_space<vmem>>, %arg1: memref<16x384xf32, #tpu.memory_space<vmem>>, %arg2: memref<16x384xf32, #tpu.memory_space<vmem>>, %arg3: memref<1x384xf32, #tpu.memory_space<vmem>>, %arg4: memref<1x384xf32, #tpu.memory_space<vmem>>, %arg5: memref<128x384xf32, #tpu.memory_space<vmem>>, %arg6: memref<128x384xf32, #tpu.memory_space<vmem>>, %arg7: memref<1x128xf32, #tpu.memory_space<vmem>>, %arg8: memref<1x128xf32, #tpu.memory_space<vmem>>, %arg9: memref<8x16xf32, #tpu.memory_space<vmem>>, %arg10: memref<8x16xf32, #tpu.memory_space<vmem>>, %arg11: memref<128x64xf32, #tpu.memory_space<vmem>>, %arg12: memref<128x64xf32, #tpu.memory_space<vmem>>, %arg13: memref<1x64xf32, #tpu.memory_space<vmem>>, %arg14: memref<1x64xf32, #tpu.memory_space<vmem>>, %arg15: memref<1x64xf32, #tpu.memory_space<vmem>>, %arg16: memref<64x64xf32, #tpu.memory_space<vmem>>, %arg17: memref<1x64xf32, #tpu.memory_space<vmem>>, %arg18: memref<1x64xf32, #tpu.memory_space<vmem>>, %arg19: memref<1x64xf32, #tpu.memory_space<vmem>>, %arg20: memref<1x64xf32, #tpu.memory_space<vmem>>, %arg21: memref<1x1xf32, #tpu.memory_space<vmem>>, %arg22: memref<8x1xf32, #tpu.memory_space<vmem>>, %arg23: memref<64x384xf32, #tpu.memory_space<vmem>>, %arg24: memref<64x384xf32, #tpu.memory_space<vmem>>) attributes {dimension_semantics = [], scalar_prefetch = 0 : i64, scratch_operands = 2 : i64, tpu.core_type = #tpu.core_type<tc>} {
    %c0 = arith.constant 0 : index
    %c0_0 = arith.constant 0 : index
    %0 = vector.load %arg0[%c0, %c0_0] : memref<64x16xf32, #tpu.memory_space<vmem>>, vector<64x16xf32>
    %c0_1 = arith.constant 0 : index
    %c0_2 = arith.constant 0 : index
    %1 = vector.load %arg1[%c0_1, %c0_2] : memref<16x384xf32, #tpu.memory_space<vmem>>, vector<16x384xf32>
    %cst = arith.constant dense<0.000000e+00> : vector<64x384xf32>
    %2 = tpu.matmul %0, %1, %cst {dimension_numbers = #tpu.dot_dimension_numbers<[1], [0], [0], [1], [0, 0, 1, 1], [], []>} : vector<64x16xf32>, vector<16x384xf32>, vector<64x384xf32> -> vector<64x384xf32>
    %c0_3 = arith.constant 0 : index
    %c0_4 = arith.constant 0 : index
    %3 = vector.load %arg3[%c0_3, %c0_4] : memref<1x384xf32, #tpu.memory_space<vmem>>, vector<1x384xf32>
    %4 = vector.broadcast %3 : vector<1x384xf32> to vector<64x384xf32>
    %5 = arith.addf %2, %4 : vector<64x384xf32>
    %c0_5 = arith.constant 0 : index
    %c0_6 = arith.constant 0 : index
    %6 = vector.load %arg23[%c0_5, %c0_6] : memref<64x384xf32, #tpu.memory_space<vmem>>, vector<64x384xf32>
    tpu.vector_store %arg23[%c0_5, %c0_6], %5 {strides = array<i32>} : memref<64x384xf32, #tpu.memory_space<vmem>>, vector<64x384xf32>,
    %c0_7 = arith.constant 0 : index
    %c0_8 = arith.constant 0 : index
    %7 = vector.load %arg2[%c0_7, %c0_8] : memref<16x384xf32, #tpu.memory_space<vmem>>, vector<16x384xf32>
    %cst_9 = arith.constant dense<0.000000e+00> : vector<64x384xf32>
    %8 = tpu.matmul %0, %7, %cst_9 {dimension_numbers = #tpu.dot_dimension_numbers<[1], [0], [0], [1], [0, 0, 1, 1], [], []>} : vector<64x16xf32>, vector<16x384xf32>, vector<64x384xf32> -> vector<64x384xf32>
    %c0_10 = arith.constant 0 : index
    %c0_11 = arith.constant 0 : index
    %9 = vector.load %arg4[%c0_10, %c0_11] : memref<1x384xf32, #tpu.memory_space<vmem>>, vector<1x384xf32>
    %10 = vector.broadcast %9 : vector<1x384xf32> to vector<64x384xf32>
    %11 = arith.addf %8, %10 : vector<64x384xf32>
    %c0_12 = arith.constant 0 : index
    %c0_13 = arith.constant 0 : index
    %12 = vector.load %arg24[%c0_12, %c0_13] : memref<64x384xf32, #tpu.memory_space<vmem>>, vector<64x384xf32>
    tpu.vector_store %arg24[%c0_12, %c0_13], %11 {strides = array<i32>} : memref<64x384xf32, #tpu.memory_space<vmem>>, vector<64x384xf32>,
    %c0_14 = arith.constant 0 : index
    %c0_15 = arith.constant 0 : index
    %13 = vector.load %arg5[%c0_14, %c0_15] : memref<128x384xf32, #tpu.memory_space<vmem>>, vector<128x384xf32>
    %c0_16 = arith.constant 0 : index
    %c0_17 = arith.constant 0 : index
    %14 = vector.load %arg6[%c0_16, %c0_17] : memref<128x384xf32, #tpu.memory_space<vmem>>, vector<128x384xf32>
    %c0_18 = arith.constant 0 : index
    %c0_19 = arith.constant 0 : index
    %15 = vector.load %arg7[%c0_18, %c0_19] : memref<1x128xf32, #tpu.memory_space<vmem>>, vector<1x128xf32>
    %16 = vector.shape_cast %15 : vector<1x128xf32> to vector<1x128xf32>
    %17 = vector.broadcast %16 : vector<1x128xf32> to vector<8x128xf32>
    %c0_20 = arith.constant 0 : index
    %c0_21 = arith.constant 0 : index
    %18 = vector.load %arg8[%c0_20, %c0_21] : memref<1x128xf32, #tpu.memory_space<vmem>>, vector<1x128xf32>
    %19 = vector.shape_cast %18 : vector<1x128xf32> to vector<1x128xf32>
    %20 = vector.broadcast %19 : vector<1x128xf32> to vector<8x128xf32>
    %cst_22 = arith.constant 0.000000e+00 : f32
    %21 = vector.broadcast %cst_22 : f32 to vector<8x128xf32>
    %c0_i32 = arith.constant 0 : i32
    %c8_i32 = arith.constant 8 : i32
    %22 = arith.addi %c0_i32, %c8_i32 : i32
    %c1_i32 = arith.constant 1 : i32
    %23:2 = scf.for %arg25 = %c0_i32 to %22 step %c1_i32 iter_args(%arg26 = %21, %arg27 = %21) -> (vector<8x128xf32>, vector<8x128xf32>)  : i32 {
      %c8_i32_71 = arith.constant 8 : i32
      %108 = arith.muli %arg25, %c8_i32_71 : i32
      %109 = tpu.assume_multiple %108, 8 : i32
      %c7_i32 = arith.constant 7 : i32
      %110 = arith.subi %c7_i32, %arg25 : i32
      %c8_i32_72 = arith.constant 8 : i32
      %111 = arith.muli %110, %c8_i32_72 : i32
      %112 = tpu.assume_multiple %111, 8 : i32
      %113 = arith.index_cast %109 : i32 to index
      %c0_73 = arith.constant 0 : index
      %114 = vector.load %arg23[%113, %c0_73] : memref<64x384xf32, #tpu.memory_space<vmem>>, vector<8x384xf32>
      %115 = arith.index_cast %112 : i32 to index
      %c0_74 = arith.constant 0 : index
      %116 = vector.load %arg24[%115, %c0_74] : memref<64x384xf32, #tpu.memory_space<vmem>>, vector<8x384xf32>
      %cst_75 = arith.constant dense<0.000000e+00> : vector<8x384xf32>
      %117 = tpu.matmul %arg26, %13, %cst_75 {dimension_numbers = #tpu.dot_dimension_numbers<[1], [0], [0], [1], [0, 0, 1, 1], [], []>} : vector<8x128xf32>, vector<128x384xf32>, vector<8x384xf32> -> vector<8x384xf32>
      %118 = vector.extract_strided_slice %114 {offsets = [0, 0], sizes = [8, 128], strides = [1, 1]} : vector<8x384xf32> to vector<8x128xf32>
      %119 = vector.extract_strided_slice %117 {offsets = [0, 0], sizes = [8, 128], strides = [1, 1]} : vector<8x384xf32> to vector<8x128xf32>
      %120 = arith.addf %118, %119 : vector<8x128xf32>
      %121 = arith.negf %120 : vector<8x128xf32>
      %122 = math.exp %121 : vector<8x128xf32>
      %cst_76 = arith.constant 1.000000e+00 : f32
      %123 = vector.broadcast %cst_76 : f32 to vector<8x128xf32>
      %124 = arith.addf %123, %122 : vector<8x128xf32>
      %125 = arith.divf %123, %124 : vector<8x128xf32>
      %126 = vector.extract_strided_slice %114 {offsets = [0, 128], sizes = [8, 128], strides = [1, 1]} : vector<8x384xf32> to vector<8x128xf32>
      %127 = vector.extract_strided_slice %117 {offsets = [0, 128], sizes = [8, 128], strides = [1, 1]} : vector<8x384xf32> to vector<8x128xf32>
      %128 = arith.addf %126, %127 : vector<8x128xf32>
      %129 = arith.negf %128 : vector<8x128xf32>
      %130 = math.exp %129 : vector<8x128xf32>
      %cst_77 = arith.constant 1.000000e+00 : f32
      %131 = vector.broadcast %cst_77 : f32 to vector<8x128xf32>
      %132 = arith.addf %131, %130 : vector<8x128xf32>
      %133 = arith.divf %131, %132 : vector<8x128xf32>
      %134 = vector.extract_strided_slice %114 {offsets = [0, 256], sizes = [8, 128], strides = [1, 1]} : vector<8x384xf32> to vector<8x128xf32>
      %135 = vector.extract_strided_slice %117 {offsets = [0, 256], sizes = [8, 128], strides = [1, 1]} : vector<8x384xf32> to vector<8x128xf32>
      %136 = arith.addf %135, %17 : vector<8x128xf32>
      %137 = arith.mulf %125, %136 : vector<8x128xf32>
      %138 = arith.addf %134, %137 : vector<8x128xf32>
      %139 = math.tanh %138 : vector<8x128xf32>
      %140 = arith.subf %arg26, %139 : vector<8x128xf32>
      %141 = arith.mulf %133, %140 : vector<8x128xf32>
      %142 = arith.addf %139, %141 : vector<8x128xf32>
      %cst_78 = arith.constant dense<0.000000e+00> : vector<8x384xf32>
      %143 = tpu.matmul %arg27, %14, %cst_78 {dimension_numbers = #tpu.dot_dimension_numbers<[1], [0], [0], [1], [0, 0, 1, 1], [], []>} : vector<8x128xf32>, vector<128x384xf32>, vector<8x384xf32> -> vector<8x384xf32>
      %144 = vector.extract_strided_slice %116 {offsets = [0, 0], sizes = [8, 128], strides = [1, 1]} : vector<8x384xf32> to vector<8x128xf32>
      %145 = vector.extract_strided_slice %143 {offsets = [0, 0], sizes = [8, 128], strides = [1, 1]} : vector<8x384xf32> to vector<8x128xf32>
      %146 = arith.addf %144, %145 : vector<8x128xf32>
      %147 = arith.negf %146 : vector<8x128xf32>
      %148 = math.exp %147 : vector<8x128xf32>
      %cst_79 = arith.constant 1.000000e+00 : f32
      %149 = vector.broadcast %cst_79 : f32 to vector<8x128xf32>
      %150 = arith.addf %149, %148 : vector<8x128xf32>
      %151 = arith.divf %149, %150 : vector<8x128xf32>
      %152 = vector.extract_strided_slice %116 {offsets = [0, 128], sizes = [8, 128], strides = [1, 1]} : vector<8x384xf32> to vector<8x128xf32>
      %153 = vector.extract_strided_slice %143 {offsets = [0, 128], sizes = [8, 128], strides = [1, 1]} : vector<8x384xf32> to vector<8x128xf32>
      %154 = arith.addf %152, %153 : vector<8x128xf32>
      %155 = arith.negf %154 : vector<8x128xf32>
      %156 = math.exp %155 : vector<8x128xf32>
      %cst_80 = arith.constant 1.000000e+00 : f32
      %157 = vector.broadcast %cst_80 : f32 to vector<8x128xf32>
      %158 = arith.addf %157, %156 : vector<8x128xf32>
      %159 = arith.divf %157, %158 : vector<8x128xf32>
      %160 = vector.extract_strided_slice %116 {offsets = [0, 256], sizes = [8, 128], strides = [1, 1]} : vector<8x384xf32> to vector<8x128xf32>
      %161 = vector.extract_strided_slice %143 {offsets = [0, 256], sizes = [8, 128], strides = [1, 1]} : vector<8x384xf32> to vector<8x128xf32>
      %162 = arith.addf %161, %20 : vector<8x128xf32>
      %163 = arith.mulf %151, %162 : vector<8x128xf32>
      %164 = arith.addf %160, %163 : vector<8x128xf32>
      %165 = math.tanh %164 : vector<8x128xf32>
      %166 = arith.subf %arg27, %165 : vector<8x128xf32>
      %167 = arith.mulf %159, %166 : vector<8x128xf32>
      %168 = arith.addf %165, %167 : vector<8x128xf32>
      scf.yield %142, %168 : vector<8x128xf32>, vector<8x128xf32>
    }
    %c8_i32_23 = arith.constant 8 : i32
    %24 = tpu.concatenate %23#0, %23#1 in 0 : vector<8x128xf32>, vector<8x128xf32> -> vector<16x128xf32>
    %c0_24 = arith.constant 0 : index
    %c0_25 = arith.constant 0 : index
    %25 = vector.load %arg9[%c0_24, %c0_25] : memref<8x16xf32, #tpu.memory_space<vmem>>, vector<8x16xf32>
    %cst_26 = arith.constant dense<0.000000e+00> : vector<8x128xf32>
    %26 = tpu.matmul %25, %24, %cst_26 {dimension_numbers = #tpu.dot_dimension_numbers<[1], [0], [0], [1], [0, 0, 1, 1], [], []>} : vector<8x16xf32>, vector<16x128xf32>, vector<8x128xf32> -> vector<8x128xf32>
    %c0_27 = arith.constant 0 : index
    %c0_28 = arith.constant 0 : index
    %27 = vector.load %arg10[%c0_27, %c0_28] : memref<8x16xf32, #tpu.memory_space<vmem>>, vector<8x16xf32>
    %cst_29 = arith.constant dense<0.000000e+00> : vector<8x128xf32>
    %28 = tpu.matmul %27, %24, %cst_29 {dimension_numbers = #tpu.dot_dimension_numbers<[1], [0], [0], [1], [0, 0, 1, 1], [], []>} : vector<8x16xf32>, vector<16x128xf32>, vector<8x128xf32> -> vector<8x128xf32>
    %c0_30 = arith.constant 0 : index
    %c0_31 = arith.constant 0 : index
    %29 = vector.load %arg11[%c0_30, %c0_31] : memref<128x64xf32, #tpu.memory_space<vmem>>, vector<128x64xf32>
    %cst_32 = arith.constant dense<0.000000e+00> : vector<8x64xf32>
    %30 = tpu.matmul %26, %29, %cst_32 {dimension_numbers = #tpu.dot_dimension_numbers<[1], [0], [0], [1], [0, 0, 1, 1], [], []>} : vector<8x128xf32>, vector<128x64xf32>, vector<8x64xf32> -> vector<8x64xf32>
    %c0_33 = arith.constant 0 : index
    %c0_34 = arith.constant 0 : index
    %31 = vector.load %arg12[%c0_33, %c0_34] : memref<128x64xf32, #tpu.memory_space<vmem>>, vector<128x64xf32>
    %cst_35 = arith.constant dense<0.000000e+00> : vector<8x64xf32>
    %32 = tpu.matmul %28, %31, %cst_35 {dimension_numbers = #tpu.dot_dimension_numbers<[1], [0], [0], [1], [0, 0, 1, 1], [], []>} : vector<8x128xf32>, vector<128x64xf32>, vector<8x64xf32> -> vector<8x64xf32>
    %33 = arith.addf %30, %32 : vector<8x64xf32>
    %c0_36 = arith.constant 0 : index
    %c0_37 = arith.constant 0 : index
    %34 = vector.load %arg13[%c0_36, %c0_37] : memref<1x64xf32, #tpu.memory_space<vmem>>, vector<1x64xf32>
    %35 = vector.broadcast %34 : vector<1x64xf32> to vector<8x64xf32>
    %36 = arith.addf %33, %35 : vector<8x64xf32>
    %cst_38 = arith.constant 0.000000e+00 : f32
    %37 = vector.broadcast %cst_38 : f32 to vector<8x64xf32>
    %38 = arith.maximumf %36, %37 : vector<8x64xf32>
    %c0_39 = arith.constant 0 : index
    %c0_40 = arith.constant 0 : index
    %39 = vector.load %arg14[%c0_39, %c0_40] : memref<1x64xf32, #tpu.memory_space<vmem>>, vector<1x64xf32>
    %c0_41 = arith.constant 0 : index
    %c0_42 = arith.constant 0 : index
    %40 = vector.load %arg15[%c0_41, %c0_42] : memref<1x64xf32, #tpu.memory_space<vmem>>, vector<1x64xf32>
    %cst_43 = arith.constant dense<0.000000e+00> : vector<8xf32>
    %41 = vector.multi_reduction <add>, %38, %cst_43 [1] : vector<8x64xf32> to vector<8xf32>
    %42 = vector.shape_cast %41 : vector<8xf32> to vector<8x1xf32>
    %cst_44 = arith.constant 6.400000e+01 : f32
    %43 = vector.broadcast %cst_44 : f32 to vector<8x1xf32>
    %44 = arith.divf %42, %43 : vector<8x1xf32>
    %45 = vector.broadcast %44 : vector<8x1xf32> to vector<8x64xf32>
    %46 = arith.subf %38, %45 : vector<8x64xf32>
    %47 = arith.mulf %46, %46 : vector<8x64xf32>
    %cst_45 = arith.constant dense<0.000000e+00> : vector<8xf32>
    %48 = vector.multi_reduction <add>, %47, %cst_45 [1] : vector<8x64xf32> to vector<8xf32>
    %49 = vector.shape_cast %48 : vector<8xf32> to vector<8x1xf32>
    %cst_46 = arith.constant 6.400000e+01 : f32
    %50 = vector.broadcast %cst_46 : f32 to vector<8x1xf32>
    %51 = arith.divf %49, %50 : vector<8x1xf32>
    %52 = vector.broadcast %44 : vector<8x1xf32> to vector<8x64xf32>
    %53 = arith.subf %38, %52 : vector<8x64xf32>
    %cst_47 = arith.constant 9.99999974E-6 : f32
    %54 = vector.broadcast %cst_47 : f32 to vector<8x1xf32>
    %55 = arith.addf %51, %54 : vector<8x1xf32>
    %56 = math.rsqrt %55 : vector<8x1xf32>
    %57 = vector.broadcast %56 : vector<8x1xf32> to vector<8x64xf32>
    %58 = arith.mulf %53, %57 : vector<8x64xf32>
    %59 = vector.broadcast %39 : vector<1x64xf32> to vector<8x64xf32>
    %60 = arith.mulf %58, %59 : vector<8x64xf32>
    %61 = vector.broadcast %40 : vector<1x64xf32> to vector<8x64xf32>
    %62 = arith.addf %60, %61 : vector<8x64xf32>
    %c0_48 = arith.constant 0 : index
    %c0_49 = arith.constant 0 : index
    %63 = vector.load %arg16[%c0_48, %c0_49] : memref<64x64xf32, #tpu.memory_space<vmem>>, vector<64x64xf32>
    %cst_50 = arith.constant dense<0.000000e+00> : vector<8x64xf32>
    %64 = tpu.matmul %62, %63, %cst_50 {dimension_numbers = #tpu.dot_dimension_numbers<[1], [0], [0], [1], [0, 0, 1, 1], [], []>} : vector<8x64xf32>, vector<64x64xf32>, vector<8x64xf32> -> vector<8x64xf32>
    %c0_51 = arith.constant 0 : index
    %c0_52 = arith.constant 0 : index
    %65 = vector.load %arg17[%c0_51, %c0_52] : memref<1x64xf32, #tpu.memory_space<vmem>>, vector<1x64xf32>
    %66 = vector.broadcast %65 : vector<1x64xf32> to vector<8x64xf32>
    %67 = arith.addf %64, %66 : vector<8x64xf32>
    %cst_53 = arith.constant 0.000000e+00 : f32
    %68 = vector.broadcast %cst_53 : f32 to vector<8x64xf32>
    %69 = arith.maximumf %67, %68 : vector<8x64xf32>
    %c0_54 = arith.constant 0 : index
    %c0_55 = arith.constant 0 : index
    %70 = vector.load %arg18[%c0_54, %c0_55] : memref<1x64xf32, #tpu.memory_space<vmem>>, vector<1x64xf32>
    %c0_56 = arith.constant 0 : index
    %c0_57 = arith.constant 0 : index
    %71 = vector.load %arg19[%c0_56, %c0_57] : memref<1x64xf32, #tpu.memory_space<vmem>>, vector<1x64xf32>
    %cst_58 = arith.constant dense<0.000000e+00> : vector<8xf32>
    %72 = vector.multi_reduction <add>, %69, %cst_58 [1] : vector<8x64xf32> to vector<8xf32>
    %73 = vector.shape_cast %72 : vector<8xf32> to vector<8x1xf32>
    %cst_59 = arith.constant 6.400000e+01 : f32
    %74 = vector.broadcast %cst_59 : f32 to vector<8x1xf32>
    %75 = arith.divf %73, %74 : vector<8x1xf32>
    %76 = vector.broadcast %75 : vector<8x1xf32> to vector<8x64xf32>
    %77 = arith.subf %69, %76 : vector<8x64xf32>
    %78 = arith.mulf %77, %77 : vector<8x64xf32>
    %cst_60 = arith.constant dense<0.000000e+00> : vector<8xf32>
    %79 = vector.multi_reduction <add>, %78, %cst_60 [1] : vector<8x64xf32> to vector<8xf32>
    %80 = vector.shape_cast %79 : vector<8xf32> to vector<8x1xf32>
    %cst_61 = arith.constant 6.400000e+01 : f32
    %81 = vector.broadcast %cst_61 : f32 to vector<8x1xf32>
    %82 = arith.divf %80, %81 : vector<8x1xf32>
    %83 = vector.broadcast %75 : vector<8x1xf32> to vector<8x64xf32>
    %84 = arith.subf %69, %83 : vector<8x64xf32>
    %cst_62 = arith.constant 9.99999974E-6 : f32
    %85 = vector.broadcast %cst_62 : f32 to vector<8x1xf32>
    %86 = arith.addf %82, %85 : vector<8x1xf32>
    %87 = math.rsqrt %86 : vector<8x1xf32>
    %88 = vector.broadcast %87 : vector<8x1xf32> to vector<8x64xf32>
    %89 = arith.mulf %84, %88 : vector<8x64xf32>
    %90 = vector.broadcast %70 : vector<1x64xf32> to vector<8x64xf32>
    %91 = arith.mulf %89, %90 : vector<8x64xf32>
    %92 = vector.broadcast %71 : vector<1x64xf32> to vector<8x64xf32>
    %93 = arith.addf %91, %92 : vector<8x64xf32>
    %c0_63 = arith.constant 0 : index
    %c0_64 = arith.constant 0 : index
    %94 = vector.load %arg20[%c0_63, %c0_64] : memref<1x64xf32, #tpu.memory_space<vmem>>, vector<1x64xf32>
    %95 = vector.broadcast %94 : vector<1x64xf32> to vector<8x64xf32>
    %96 = arith.mulf %93, %95 : vector<8x64xf32>
    %cst_65 = arith.constant dense<0.000000e+00> : vector<8xf32>
    %97 = vector.multi_reduction <add>, %96, %cst_65 [1] : vector<8x64xf32> to vector<8xf32>
    %98 = vector.shape_cast %97 : vector<8xf32> to vector<8x1xf32>
    %c0_66 = arith.constant 0 : index
    %c0_67 = arith.constant 0 : index
    %99 = vector.load %arg21[%c0_66, %c0_67] : memref<1x1xf32, #tpu.memory_space<vmem>>, vector<1x1xf32>
    %100 = vector.broadcast %99 : vector<1x1xf32> to vector<8x1xf32>
    %101 = arith.addf %98, %100 : vector<8x1xf32>
    %102 = arith.negf %101 : vector<8x1xf32>
    %103 = math.exp %102 : vector<8x1xf32>
    %cst_68 = arith.constant 1.000000e+00 : f32
    %104 = vector.broadcast %cst_68 : f32 to vector<8x1xf32>
    %105 = arith.addf %104, %103 : vector<8x1xf32>
    %106 = arith.divf %104, %105 : vector<8x1xf32>
    %c0_69 = arith.constant 0 : index
    %c0_70 = arith.constant 0 : index
    %107 = vector.load %arg22[%c0_69, %c0_70] : memref<8x1xf32, #tpu.memory_space<vmem>>, vector<8x1xf32>
    tpu.vector_store %arg22[%c0_69, %c0_70], %106 {strides = array<i32>} : memref<8x1xf32, #tpu.memory_space<vmem>>, vector<8x1xf32>,
    return
  }
}

</mosaic_0001>

<bundles_post_ra>
// kernel: tpu_custom_call.1
= control target key start
LH: loop header
LB: loop body
LE: loop exit
PB: predicated region body
PF: predicated region fallthrough
CT: control target
= control target key end

     0   :  { %s3635_s0 = inlined_call_operand.vmem [shape: f32[64,16], index: 0, kind: input, shape index: {}]   ;;  %s3636_s1 = inlined_call_operand.hbm [shape: f32[16,384], index: 1, kind: input, shape index: {}]   ;;  %s3637_s2 = inlined_call_operand.hbm [shape: f32[16,384], index: 2, kind: input, shape index: {}]   ;;  %s3638_s3 = inlined_call_operand.hbm [shape: f32[1,384], index: 3, kind: input, shape index: {}]   ;;  %s3639_s4 = inlined_call_operand.hbm [shape: f32[1,384], index: 4, kind: input, shape index: {}]   ;;  %s3640_s5 = inlined_call_operand.vmem [shape: f32[128,384], index: 5, kind: input, shape index: {}]   ;;  %s3641_s6 = inlined_call_operand.hbm [shape: f32[128,384], index: 6, kind: input, shape index: {}]   ;;  %s3642_s7 = inlined_call_operand.vmem [shape: f32[1,128], index: 7, kind: input, shape index: {}]   ;;  %s3643_s8 = inlined_call_operand.hbm [shape: f32[1,128], index: 8, kind: input, shape index: {}]   ;;  %s3644_s9 = inlined_call_operand.hbm [shape: f32[8,16], index: 9, kind: input, shape index: {}]   ;;  %s3645_s10 = inlined_call_operand.hbm [shape: f32[8,16], index: 10, kind: input, shape index: {}]   ;;  %s3646_s11 = inlined_call_operand.vmem [shape: f32[128,64], index: 11, kind: input, shape index: {}]   ;;  %s3647_s12 = inlined_call_operand.vmem [shape: f32[128,64], index: 12, kind: input, shape index: {}]   ;;  %s3648_s13 = inlined_call_operand.vmem [shape: f32[1,64], index: 13, kind: input, shape index: {}]   ;;  %s3649_s14 = inlined_call_operand.vmem [shape: f32[1,64], index: 14, kind: input, shape index: {}]   ;;  %s3650_s15 = inlined_call_operand.vmem [shape: f32[1,64], index: 15, kind: input, shape index: {}]   ;;  %s3651_s16 = inlined_call_operand.hbm [shape: f32[64,64], index: 16, kind: input, shape index: {}]   ;;  %s3652_s17 = inlined_call_operand.vmem [shape: f32[1,64], index: 17, kind: input, shape index: {}]   ;;  %s3653_s18 = inlined_call_operand.vmem [shape: f32[1,64], index: 18, kind: input, shape index: {}]   ;;  %s3654_s19 = inlined_call_operand.vmem [shape: f32[1,64], index: 19, kind: input, shape index: {}]   ;;  %s3655_s20 = inlined_call_operand.vmem [shape: f32[1,64], index: 20, kind: input, shape index: {}]   ;;  %s3656_s21 = inlined_call_operand.<no memory space> [shape: f32[1,1], index: 21, kind: input, shape index: {}]   ;;  %s3657_s22 = inlined_call_operand.vmem [shape: f32[8,1], index: 22, kind: output, shape index: {}]  }
   0x1   :  { %3671 = sst [smem:[#allocation81_spill]] %s3635_s0  ;;  %v27_v0 = vstv %s3656_s21 }
   0x2   :  { %3672 = sst [smem:[#allocation82_spill]] %s3636_s1  ;;  %28 = vst [vmem:[#allocation4] sm:$0x1] %v27_v0 }
   0x3   :  { %3673 = sst [smem:[#allocation83_spill]] %s3637_s2 }
   0x4   :  { %3674 = sst [smem:[#allocation84_spill]] %s3638_s3 }
   0x5   :  { %3675 = sst [smem:[#allocation85_spill]] %s3639_s4 }
   0x6   :  { %3676 = sst [smem:[#allocation86_spill]] %s3640_s5 }
   0x7   :  { %3677 = sst [smem:[#allocation87_spill]] %s3641_s6 }
   0x8   :  { %29 = vsyncpa [#allocation6], 0 }
   0x9   :  { %30 = vsyncpa [#allocation8], 0 }
   0xa   :  { %31 = vsyncpa [#allocation11], 0 }
   0xb   :  { %32 = vsyncpa [#allocation14], 0 }
   0xc   :  { %33 = vsyncpa [#allocation17], 0  ;;  %s2599_s29 = smov [#allocation7]   ;;  %s2600_s4 = smov [#allocation10]  }
   0xd   :  { %s53_s30 = sshll.u32 %s2599_s29, 4  ;;  %s76_s0 = sshll.u32 %s2600_s4, 4  ;;  %s54_s30 = int_to_ptr.vmem [resolvable:$true] %s53_s30  ;;  %s2736_s0 = int_to_ptr.vmem [resolvable:$true] %s76_s0 }
   0xe   :  { %s3678_s5 = sld [smem:[#allocation83_spill]] }
  0x14   :  { %s2367_s24 = scalar_lea.hbm %s3678_s5, 768 }
  0x15   :  { %p2368_p0 = scmp.ne.s32.totalorder %s3678_s5, %s2367_s24  ;;  %p2371_p1 = scmp.lt.u32.totalorder %s2367_s24, %s3678_s5 }
  0x17   :  { %p2373_p2 = pnand %p2371_p1, %p2368_p0 }
  0x19   :  { %2376 = shalt.err (!%p2373_p2)
}
  0x1a   :  { %s2377_s2 = scalar_lea.vmem %s54_s30, 768  ;;  %p2382_p4 = scmp.lt.s32.totalorder %s54_s30, %s54_s30 }
  0x1b   :  { %p2378_p3 = scmp.ne.s32.totalorder %s54_s30, %s2377_s2  ;;  %p2383_p5 = scmp.lt.s32.totalorder %s2377_s2, %s2377_s2 }
  0x1d   :  { %p2384_p6 = por %p2383_p5, %p2382_p4 }
  0x1f   :  { %p2385_p7 = pnand %p2384_p6, %p2378_p3 }
  0x21   :  { %2388 = shalt.err (!%p2385_p7)
}
  0x22   :  { %s3665_s27 = smov 384   ;;  %s2602_s3 = smov 24  }
  0x23   :  { %59 = dma.hbm_to_vmem [thread:$0]  %s3678_s5, 768, %s54_s30, [#allocation8], %s3665_s27, %s3665_s27, %s2602_s3  }
  0x24   :  { %s3679_s1 = sld [smem:[#allocation85_spill]] }
  0x2a   :  { %s2389_s24 = scalar_lea.hbm %s3679_s1, 48 }
  0x2b   :  { %p2390_p8 = scmp.ne.s32.totalorder %s3679_s1, %s2389_s24  ;;  %p2393_p9 = scmp.lt.u32.totalorder %s2389_s24, %s3679_s1 }
  0x2d   :  { %p2395_p10 = pnand %p2393_p9, %p2390_p8 }
  0x2f   :  { %2398 = shalt.err (!%p2395_p10)
}
  0x30   :  { %s2399_s2 = scalar_lea.vmem %s2736_s0, 48  ;;  %s2403_s30 = scalar_lea.vmem %s2736_s0, 64 }
  0x31   :  { %p2400_p11 = scmp.ne.s32.totalorder %s2736_s0, %s2399_s2  ;;  %p2404_p12 = scmp.lt.s32.totalorder %s2736_s0, %s2736_s0 }
  0x32   :  { %p2405_p13 = scmp.lt.s32.totalorder %s2403_s30, %s2399_s2 }
  0x34   :  { %p2406_p0 = por %p2405_p13, %p2404_p12 }
  0x36   :  { %p2407_p1 = pnand %p2406_p0, %p2400_p11 }
  0x38   :  { %2410 = shalt.err (!%p2407_p1)
}
  0x39   :  { %79 = dma.hbm_to_vmem [thread:$0]  %s3679_s1, 48, %s2736_s0, [#allocation11]  }
  0x3a   :  { %s2603_s29 = smov [#allocation13]   ;;  %s2604_s23 = smov [#allocation16]  }
  0x3b   :  { %s102_s4 = sshll.u32 %s2603_s29, 4  ;;  %s122_s24 = sshll.u32 %s2604_s23, 4  ;;  %s103_s4 = int_to_ptr.vmem [resolvable:$true] %s102_s4  ;;  %s123_s24 = int_to_ptr.vmem [resolvable:$true] %s122_s24 }
  0x3c   :  { %s2411_s21 = scalar_lea.hbm %s3643_s8, 16 }
  0x3d   :  { %p2412_p2 = scmp.ne.s32.totalorder %s3643_s8, %s2411_s21  ;;  %p2415_p3 = scmp.lt.u32.totalorder %s2411_s21, %s3643_s8 }
  0x3f   :  { %p2417_p4 = pnand %p2415_p3, %p2412_p2 }
  0x41   :  { %2420 = shalt.err (!%p2417_p4)
}
  0x42   :  { %s2421_s0 = scalar_lea.vmem %s103_s4, 16  ;;  %s2425_s1 = scalar_lea.vmem %s103_s4, 32 }
  0x43   :  { %p2422_p5 = scmp.ne.s32.totalorder %s103_s4, %s2421_s0  ;;  %p2426_p6 = scmp.lt.s32.totalorder %s103_s4, %s103_s4 }
  0x44   :  { %p2427_p7 = scmp.lt.s32.totalorder %s2425_s1, %s2421_s0 }
  0x46   :  { %p2428_p8 = por %p2427_p7, %p2426_p6 }
  0x48   :  { %p2429_p9 = pnand %p2428_p8, %p2422_p5 }
  0x4a   :  { %2432 = shalt.err (!%p2429_p9)
}
  0x4b   :  { %105 = dma.hbm_to_vmem [thread:$0]  %s3643_s8, 16, %s103_s4, [#allocation14]  }
  0x4c   :  { %s2433_s6 = scalar_lea.hbm %s3645_s10, 128 }
  0x4d   :  { %p2434_p10 = scmp.ne.s32.totalorder %s3645_s10, %s2433_s6  ;;  %p2437_p11 = scmp.lt.u32.totalorder %s2433_s6, %s3645_s10 }
  0x4f   :  { %p2439_p12 = pnand %p2437_p11, %p2434_p10 }
  0x51   :  { %2442 = shalt.err (!%p2439_p12)
}
  0x52   :  { %s2443_s2 = scalar_lea.vmem %s123_s24, 128  ;;  %p2448_p0 = scmp.lt.s32.totalorder %s123_s24, %s123_s24 }
  0x53   :  { %p2444_p13 = scmp.ne.s32.totalorder %s123_s24, %s2443_s2  ;;  %p2449_p1 = scmp.lt.s32.totalorder %s2443_s2, %s2443_s2 }
  0x55   :  { %p2450_p2 = por %p2449_p1, %p2448_p0 }
  0x57   :  { %p2451_p3 = pnand %p2450_p2, %p2444_p13 }
  0x59   :  { %2454 = shalt.err (!%p2451_p3)
}
  0x5a   :  { %125 = dma.hbm_to_vmem [thread:$0]  %s3645_s10, 128, %s123_s24, [#allocation17]  }
  0x5b   :  { %s2605_s30 = smov [#allocation5]   ;;  %s2606_s1 = smov [#allocation9]  }
  0x5c   :  { %s41_s0 = sshll.u32 %s2605_s30, 4  ;;  %s66_s5 = sshll.u32 %s2606_s1, 4  ;;  %s42_s0 = int_to_ptr.vmem [resolvable:$true] %s41_s0  ;;  %s67_s5 = int_to_ptr.vmem [resolvable:$true] %s66_s5 }
  0x5d   :  { %s3680_s23 = sld [smem:[#allocation82_spill]] }
  0x63   :  { %s2455_s6 = scalar_lea.hbm %s3680_s23, 768 }
  0x64   :  { %p2456_p4 = scmp.ne.s32.totalorder %s3680_s23, %s2455_s6  ;;  %p2459_p5 = scmp.lt.u32.totalorder %s2455_s6, %s3680_s23 }
  0x66   :  { %p2461_p6 = pnand %p2459_p5, %p2456_p4 }
  0x68   :  { %2464 = shalt.err (!%p2461_p6)
}
  0x69   :  { %s2465_s10 = scalar_lea.vmem %s42_s0, 768  ;;  %p2470_p8 = scmp.lt.s32.totalorder %s42_s0, %s42_s0 }
  0x6a   :  { %p2466_p7 = scmp.ne.s32.totalorder %s42_s0, %s2465_s10  ;;  %p2471_p9 = scmp.lt.s32.totalorder %s2465_s10, %s2465_s10 }
  0x6c   :  { %p2472_p10 = por %p2471_p9, %p2470_p8 }
  0x6e   :  { %p2473_p11 = pnand %p2472_p10, %p2466_p7 }
  0x70   :  { %2476 = shalt.err (!%p2473_p11)
}
  0x71   :  { %s3681_s24 = smov 384   ;;  %s3682_s1 = sld [smem:[#allocation84_spill]] }
  0x72   :  { %47 = dma.hbm_to_vmem [thread:$0]  %s3680_s23, 768, %s42_s0, [#allocation6], %s3681_s24, %s3681_s24, %s2602_s3  }
  0x77   :  { %s2477_s28 = scalar_lea.hbm %s3682_s1, 48 }
  0x78   :  { %p2478_p12 = scmp.ne.s32.totalorder %s3682_s1, %s2477_s28  ;;  %p2481_p13 = scmp.lt.u32.totalorder %s2477_s28, %s3682_s1 }
  0x7a   :  { %p2483_p0 = pnand %p2481_p13, %p2478_p12 }
  0x7c   :  { %2486 = shalt.err (!%p2483_p0)
}
  0x7d   :  { %s2487_s21 = scalar_lea.vmem %s67_s5, 48  ;;  %s2491_s26 = scalar_lea.vmem %s67_s5, 64 }
  0x7e   :  { %p2488_p1 = scmp.ne.s32.totalorder %s67_s5, %s2487_s21  ;;  %p2492_p2 = scmp.lt.s32.totalorder %s67_s5, %s67_s5 }
  0x7f   :  { %p2493_p3 = scmp.lt.s32.totalorder %s2491_s26, %s2487_s21 }
  0x81   :  { %p2494_p4 = por %p2493_p3, %p2492_p2 }
  0x83   :  { %p2495_p5 = pnand %p2494_p4, %p2488_p1 }
  0x85   :  { %2498 = shalt.err (!%p2495_p5)
}
  0x86   :  { %69 = dma.hbm_to_vmem [thread:$0]  %s3682_s1, 48, %s67_s5, [#allocation8]  }
  0x87   :  { %s2607_s10 = smov [#allocation12]   ;;  %s2608_s8 = smov [#allocation15]  }
  0x88   :  { %s87_s2 = sshll.u32 %s2607_s10, 4  ;;  %s112_s4 = sshll.u32 %s2608_s8, 4  ;;  %s88_s2 = int_to_ptr.vmem [resolvable:$true] %s87_s2  ;;  %s113_s4 = int_to_ptr.vmem [resolvable:$true] %s112_s4 }
  0x89   :  { %s3683_s29 = sld [smem:[#allocation87_spill]] }
  0x8f   :  { %s2499_s6 = scalar_lea.hbm %s3683_s29, 6144 }
  0x90   :  { %p2500_p6 = scmp.ne.s32.totalorder %s3683_s29, %s2499_s6  ;;  %p2503_p7 = scmp.lt.u32.totalorder %s2499_s6, %s3683_s29 }
  0x92   :  { %p2505_p8 = pnand %p2503_p7, %p2500_p6 }
  0x94   :  { %2508 = shalt.err (!%p2505_p8)
}
  0x95   :  { %s2509_s5 = scalar_lea.vmem %s88_s2, 6144  ;;  %p2514_p10 = scmp.lt.s32.totalorder %s88_s2, %s88_s2 }
  0x96   :  { %p2510_p9 = scmp.ne.s32.totalorder %s88_s2, %s2509_s5  ;;  %p2515_p11 = scmp.lt.s32.totalorder %s2509_s5, %s2509_s5 }
  0x98   :  { %p2516_p12 = por %p2515_p11, %p2514_p10 }
  0x9a   :  { %p2517_p13 = pnand %p2516_p12, %p2510_p9 }
  0x9c   :  { %2520 = shalt.err (!%p2517_p13)
}
  0x9d   :  { %93 = dma.hbm_to_vmem [thread:$0]  %s3683_s29, 6144, %s88_s2, [#allocation11], %s3681_s24, %s3681_s24, %s2602_s3  }
  0x9e   :  { %s2521_s8 = scalar_lea.hbm %s3644_s9, 128 }
  0x9f   :  { %p2522_p0 = scmp.ne.s32.totalorder %s3644_s9, %s2521_s8  ;;  %p2525_p1 = scmp.lt.u32.totalorder %s2521_s8, %s3644_s9 }
  0xa1   :  { %p2527_p2 = pnand %p2525_p1, %p2522_p0 }
  0xa3   :  { %2530 = shalt.err (!%p2527_p2)
}
  0xa4   :  { %s2531_s25 = scalar_lea.vmem %s113_s4, 128  ;;  %p2536_p4 = scmp.lt.s32.totalorder %s113_s4, %s113_s4 }
  0xa5   :  { %p2532_p3 = scmp.ne.s32.totalorder %s113_s4, %s2531_s25  ;;  %p2537_p5 = scmp.lt.s32.totalorder %s2531_s25, %s2531_s25 }
  0xa7   :  { %p2538_p6 = por %p2537_p5, %p2536_p4 }
  0xa9   :  { %p2539_p7 = pnand %p2538_p6, %p2532_p3 }
  0xab   :  { %2542 = shalt.err (!%p2539_p7)
}
  0xac   :  { %115 = dma.hbm_to_vmem [thread:$0]  %s3644_s9, 128, %s113_s4, [#allocation14]  }
  0xad   :  { %s2609_s2 = smov [#allocation18]   ;;  %s2543_s5 = scalar_lea.hbm %s3651_s16, 1024 }
  0xae   :  { %s141_s29 = sshll.u32 %s2609_s2, 4  ;;  %p2544_p8 = scmp.ne.s32.totalorder %s3651_s16, %s2543_s5  ;;  %s142_s29 = int_to_ptr.vmem [resolvable:$true] %s141_s29 }
  0xaf   :  { %p2547_p9 = scmp.lt.u32.totalorder %s2543_s5, %s3651_s16 }
  0xb1   :  { %p2549_p10 = pnand %p2547_p9, %p2544_p8 }
  0xb3   :  { %2552 = shalt.err (!%p2549_p10)
}
  0xb4   :  { %s2553_s8 = scalar_lea.vmem %s142_s29, 1024  ;;  %p2558_p12 = scmp.lt.s32.totalorder %s142_s29, %s142_s29 }
  0xb5   :  { %p2554_p11 = scmp.ne.s32.totalorder %s142_s29, %s2553_s8  ;;  %p2559_p13 = scmp.lt.s32.totalorder %s2553_s8, %s2553_s8 }
  0xb7   :  { %p2560_p0 = por %p2559_p13, %p2558_p12 }
  0xb9   :  { %p2561_p1 = pnand %p2560_p0, %p2554_p11 }
  0xbb   :  { %2564 = shalt.err (!%p2561_p1)
}
  0xbc   :  { %s2610_s9 = smov 128   ;;  %s2611_s4 = smov 8  }
  0xbd   :  { %147 = dma.hbm_to_vmem [thread:$0]  %s3651_s16, 1024, %s142_s29, [#allocation17], %s2610_s9, %s2610_s9, %s2611_s4  }
  0xbe   :  { %2577 = dma.done.wait [#allocation6], 768  }
  0xbf   :  { %2578 = vsyncadd [#allocation6], 4294966528 }
  0xc0   :  { %2579 = dma.done.wait [#allocation8], 816  }
  0xc1   :  { %2580 = vsyncadd [#allocation8], 4294966480 }
  0xc2   :  { %2581 = dma.done.wait [#allocation11], 6192  }
  0xc3   :  { %2582 = vsyncadd [#allocation11], 4294961104 }
  0xc4   :  { %2583 = dma.done.wait [#allocation14], 144  }
  0xc5   :  { %2584 = vsyncadd [#allocation14], 4294967152 }
  0xc6   :  { %2585 = dma.done.wait [#allocation17], 1152  }
  0xc7   :  { %2586 = vsyncadd [#allocation17], 4294966144  ;;  %v3667_v1 = vmov 0.0   ;;  %s3684_s25 = sld [smem:[#allocation86_spill]]  ;;  %v3102_v50 = vld [vmem:[#allocation12] sm:$0xff]  ;;  %v3104_v51 = vld [vmem:[#allocation12 + $0x8] sm:$0xff] }
  0xc8   :  { %305 = vmatprep.mubr.f32.mxu0 %v3667_v1  ;;  %3692 = vst [vmem:[#allocation31_spill] sm:$0xff] %v3102_v50  ;;  %3693 = vst [vmem:[#allocation32_spill] sm:$0xff] %v3104_v51  ;;  %v3106_v52 = vld [vmem:[#allocation12 + $0x10] sm:$0xff]  ;;  %v3108_v53 = vld [vmem:[#allocation12 + $0x18] sm:$0xff]  ;;  %vm216_vm0 = vcmask 130048   ;;  %s3742_s24 = sld [smem:[#allocation81_spill]] }
  0xc9   :  { %3694 = vst [vmem:[#allocation33_spill] sm:$0xff] %v3106_v52  ;;  %3695 = vst [vmem:[#allocation34_spill] sm:$0xff] %v3108_v53  ;;  %v3110_v54 = vld [vmem:[#allocation12 + $0x20] sm:$0xff]  ;;  %v3112_v55 = vld [vmem:[#allocation12 + $0x28] sm:$0xff]  ;;  %s3329_s28 = smov 0  }
  0xca   :  { %3696 = vst [vmem:[#allocation35_spill] sm:$0xff] %v3110_v54  ;;  %3697 = vst [vmem:[#allocation36_spill] sm:$0xff] %v3112_v55  ;;  %v3114_v56 = vld [vmem:[#allocation12 + $0x30] sm:$0xff]  ;;  %v3116_v57 = vld [vmem:[#allocation12 + $0x38] sm:$0xff] }
  0xcb   :  { %3698 = vst [vmem:[#allocation37_spill] sm:$0xff] %v3114_v56  ;;  %3699 = vst [vmem:[#allocation38_spill] sm:$0xff] %v3116_v57  ;;  %v3118_v58 = vld [vmem:[#allocation12 + $0x40] sm:$0xff]  ;;  %v3120_v59 = vld [vmem:[#allocation12 + $0x48] sm:$0xff] }
  0xcc   :  { %3700 = vst [vmem:[#allocation39_spill] sm:$0xff] %v3118_v58  ;;  %3701 = vst [vmem:[#allocation40_spill] sm:$0xff] %v3120_v59  ;;  %v3122_v60 = vld [vmem:[#allocation12 + $0x50] sm:$0xff]  ;;  %v3124_v61 = vld [vmem:[#allocation12 + $0x58] sm:$0xff] }
  0xcd   :  { %v2865_v2 = vld [vmem:[%s3684_s25] sm:$0xff]  ;;  %v2870_v3 = vld [vmem:[%s3684_s25 + $0x8] sm:$0xff]  ;;  %v2875_v4 = vld [vmem:[%s3684_s25 + $0x10] sm:$0xff]  ;;  %3702 = vst [vmem:[#allocation41_spill] sm:$0xff] %v3122_v60 }
  0xce   :  { %v2880_v5 = vld [vmem:[%s3684_s25 + $0x18] sm:$0xff]  ;;  %v2885_v6 = vld [vmem:[%s3684_s25 + $0x20] sm:$0xff]  ;;  %v2890_v7 = vld [vmem:[%s3684_s25 + $0x28] sm:$0xff]  ;;  %3703 = vst [vmem:[#allocation42_spill] sm:$0xff] %v3124_v61 }
  0xcf   :  { %v2895_v8 = vld [vmem:[%s3684_s25 + $0x30] sm:$0xff]  ;;  %v2900_v9 = vld [vmem:[%s3684_s25 + $0x38] sm:$0xff]  ;;  %v2905_v10 = vld [vmem:[%s3684_s25 + $0x40] sm:$0xff] }
  0xd0   :  { %v2910_v11 = vld [vmem:[%s3684_s25 + $0x48] sm:$0xff]  ;;  %v2915_v12 = vld [vmem:[%s3684_s25 + $0x50] sm:$0xff]  ;;  %v2920_v13 = vld [vmem:[%s3684_s25 + $0x58] sm:$0xff] }
  0xd1   :  { %v2925_v14 = vld [vmem:[%s3684_s25 + $0x60] sm:$0xff]  ;;  %v2930_v15 = vld [vmem:[%s3684_s25 + $0x68] sm:$0xff]  ;;  %v2935_v16 = vld [vmem:[%s3684_s25 + $0x70] sm:$0xff] }
  0xd2   :  { %v2940_v17 = vld [vmem:[%s3684_s25 + $0x78] sm:$0xff]  ;;  %v2945_v18 = vld [vmem:[%s3684_s25 + $0x80] sm:$0xff]  ;;  %v2950_v19 = vld [vmem:[%s3684_s25 + $0x88] sm:$0xff] }
  0xd3   :  { %v2955_v20 = vld [vmem:[%s3684_s25 + $0x90] sm:$0xff]  ;;  %v2960_v21 = vld [vmem:[%s3684_s25 + $0x98] sm:$0xff]  ;;  %v2965_v22 = vld [vmem:[%s3684_s25 + $0xa0] sm:$0xff] }
  0xd4   :  { %v2970_v23 = vld [vmem:[%s3684_s25 + $0xa8] sm:$0xff]  ;;  %v2975_v24 = vld [vmem:[%s3684_s25 + $0xb0] sm:$0xff]  ;;  %v2980_v25 = vld [vmem:[%s3684_s25 + $0xb8] sm:$0xff] }
  0xd5   :  { %v2985_v26 = vld [vmem:[%s3684_s25 + $0xc0] sm:$0xff]  ;;  %v2990_v27 = vld [vmem:[%s3684_s25 + $0xc8] sm:$0xff]  ;;  %v2995_v28 = vld [vmem:[%s3684_s25 + $0xd0] sm:$0xff] }
  0xd6   :  { %v3000_v29 = vld [vmem:[%s3684_s25 + $0xd8] sm:$0xff]  ;;  %v3005_v30 = vld [vmem:[%s3684_s25 + $0xe0] sm:$0xff]  ;;  %v3010_v31 = vld [vmem:[%s3684_s25 + $0xe8] sm:$0xff] }
  0xd7   :  { %v3015_v32 = vld [vmem:[%s3684_s25 + $0xf0] sm:$0xff]  ;;  %v3020_v33 = vld [vmem:[%s3684_s25 + $0xf8] sm:$0xff]  ;;  %v3025_v34 = vld [vmem:[%s3684_s25 + $0x100] sm:$0xff] }
  0xd8   :  { %v3030_v35 = vld [vmem:[%s3684_s25 + $0x108] sm:$0xff]  ;;  %v3035_v36 = vld [vmem:[%s3684_s25 + $0x110] sm:$0xff]  ;;  %v3040_v37 = vld [vmem:[%s3684_s25 + $0x118] sm:$0xff] }
  0xd9   :  { %v3045_v38 = vld [vmem:[%s3684_s25 + $0x120] sm:$0xff]  ;;  %v3050_v39 = vld [vmem:[%s3684_s25 + $0x128] sm:$0xff]  ;;  %v3055_v40 = vld [vmem:[%s3684_s25 + $0x130] sm:$0xff] }
  0xda   :  { %3685 = vst [vmem:[#allocation24_spill] sm:$0xff] %v3055_v40  ;;  %v3060_v41 = vld [vmem:[%s3684_s25 + $0x138] sm:$0xff]  ;;  %v3065_v42 = vld [vmem:[%s3684_s25 + $0x140] sm:$0xff]  ;;  %v3070_v43 = vld [vmem:[%s3684_s25 + $0x148] sm:$0xff] }
  0xdb   :  { %3686 = vst [vmem:[#allocation25_spill] sm:$0xff] %v3070_v43  ;;  %v3075_v44 = vld [vmem:[%s3684_s25 + $0x150] sm:$0xff]  ;;  %v3080_v45 = vld [vmem:[%s3684_s25 + $0x158] sm:$0xff]  ;;  %v3085_v46 = vld [vmem:[%s3684_s25 + $0x160] sm:$0xff] }
  0xdc   :  { %3687 = vst [vmem:[#allocation26_spill] sm:$0xff] %v3075_v44  ;;  %3688 = vst [vmem:[#allocation27_spill] sm:$0xff] %v3085_v46  ;;  %v3090_v47 = vld [vmem:[%s3684_s25 + $0x168] sm:$0xff]  ;;  %v3095_v48 = vld [vmem:[%s3684_s25 + $0x170] sm:$0xff] }
  0xdd   :  { %3689 = vst [vmem:[#allocation28_spill] sm:$0xff] %v3090_v47  ;;  %3690 = vst [vmem:[#allocation29_spill] sm:$0xff] %v3095_v48  ;;  %v3100_v49 = vld [vmem:[%s3684_s25 + $0x178] sm:$0xff]  ;;  %v3126_v62 = vld [vmem:[#allocation12 + $0x60] sm:$0xff] }
  0xde   :  { %3691 = vst [vmem:[#allocation30_spill] sm:$0xff] %v3100_v49  ;;  %3704 = vst [vmem:[#allocation43_spill] sm:$0xff] %v3126_v62  ;;  %v3128_v63 = vld [vmem:[#allocation12 + $0x68] sm:$0xff]  ;;  %v3130_v0 = vld [vmem:[#allocation12 + $0x70] sm:$0xff] }
  0xdf   :  { %3705 = vst [vmem:[#allocation44_spill] sm:$0xff] %v3128_v63  ;;  %3706 = vst [vmem:[#allocation45_spill] sm:$0xff] %v3130_v0  ;;  %v3132_v1 = vld [vmem:[#allocation12 + $0x78] sm:$0xff]  ;;  %v3134_v55 = vld [vmem:[#allocation12 + $0x80] sm:$0xff] }
  0xe0   :  { %3707 = vst [vmem:[#allocation46_spill] sm:$0xff] %v3132_v1  ;;  %3708 = vst [vmem:[#allocation47_spill] sm:$0xff] %v3134_v55  ;;  %v3136_v56 = vld [vmem:[#allocation12 + $0x88] sm:$0xff]  ;;  %v3138_v52 = vld [vmem:[#allocation12 + $0x90] sm:$0xff] }
  0xe1   :  { %3709 = vst [vmem:[#allocation48_spill] sm:$0xff] %v3136_v56  ;;  %3710 = vst [vmem:[#allocation49_spill] sm:$0xff] %v3138_v52  ;;  %v3140_v58 = vld [vmem:[#allocation12 + $0x98] sm:$0xff]  ;;  %v3142_v59 = vld [vmem:[#allocation12 + $0xa0] sm:$0xff] }
  0xe2   :  { %3711 = vst [vmem:[#allocation50_spill] sm:$0xff] %v3140_v58  ;;  %3712 = vst [vmem:[#allocation51_spill] sm:$0xff] %v3142_v59  ;;  %v3144_v60 = vld [vmem:[#allocation12 + $0xa8] sm:$0xff]  ;;  %v3146_v61 = vld [vmem:[#allocation12 + $0xb0] sm:$0xff] }
  0xe3   :  { %3713 = vst [vmem:[#allocation52_spill] sm:$0xff] %v3144_v60  ;;  %3714 = vst [vmem:[#allocation53_spill] sm:$0xff] %v3146_v61  ;;  %v3148_v62 = vld [vmem:[#allocation12 + $0xb8] sm:$0xff]  ;;  %v3150_v63 = vld [vmem:[#allocation12 + $0xc0] sm:$0xff] }
  0xe4   :  { %3715 = vst [vmem:[#allocation54_spill] sm:$0xff] %v3148_v62  ;;  %3716 = vst [vmem:[#allocation55_spill] sm:$0xff] %v3150_v63  ;;  %v3152_v0 = vld [vmem:[#allocation12 + $0xc8] sm:$0xff]  ;;  %v3154_v1 = vld [vmem:[#allocation12 + $0xd0] sm:$0xff] }
  0xe5   :  { %3717 = vst [vmem:[#allocation56_spill] sm:$0xff] %v3152_v0  ;;  %3718 = vst [vmem:[#allocation57_spill] sm:$0xff] %v3154_v1  ;;  %v3156_v55 = vld [vmem:[#allocation12 + $0xd8] sm:$0xff]  ;;  %v3158_v56 = vld [vmem:[#allocation12 + $0xe0] sm:$0xff] }
  0xe6   :  { %3719 = vst [vmem:[#allocation58_spill] sm:$0xff] %v3156_v55  ;;  %3720 = vst [vmem:[#allocation59_spill] sm:$0xff] %v3158_v56  ;;  %v3160_v52 = vld [vmem:[#allocation12 + $0xe8] sm:$0xff]  ;;  %v3162_v58 = vld [vmem:[#allocation12 + $0xf0] sm:$0xff] }
  0xe7   :  { %3721 = vst [vmem:[#allocation60_spill] sm:$0xff] %v3160_v52  ;;  %3722 = vst [vmem:[#allocation61_spill] sm:$0xff] %v3162_v58  ;;  %v3164_v59 = vld [vmem:[#allocation12 + $0xf8] sm:$0xff]  ;;  %v3166_v60 = vld [vmem:[#allocation12 + $0x100] sm:$0xff] }
  0xe8   :  { %3723 = vst [vmem:[#allocation62_spill] sm:$0xff] %v3164_v59  ;;  %3724 = vst [vmem:[#allocation63_spill] sm:$0xff] %v3166_v60  ;;  %v3168_v61 = vld [vmem:[#allocation12 + $0x108] sm:$0xff]  ;;  %v3170_v62 = vld [vmem:[#allocation12 + $0x110] sm:$0xff] }
  0xe9   :  { %3725 = vst [vmem:[#allocation64_spill] sm:$0xff] %v3168_v61  ;;  %3726 = vst [vmem:[#allocation65_spill] sm:$0xff] %v3170_v62  ;;  %v3172_v63 = vld [vmem:[#allocation12 + $0x118] sm:$0xff]  ;;  %v3174_v0 = vld [vmem:[#allocation12 + $0x120] sm:$0xff] }
  0xea   :  { %3727 = vst [vmem:[#allocation66_spill] sm:$0xff] %v3172_v63  ;;  %3728 = vst [vmem:[#allocation67_spill] sm:$0xff] %v3174_v0  ;;  %v3176_v1 = vld [vmem:[#allocation12 + $0x128] sm:$0xff]  ;;  %v3178_v55 = vld [vmem:[#allocation12 + $0x130] sm:$0xff] }
  0xeb   :  { %3729 = vst [vmem:[#allocation68_spill] sm:$0xff] %v3176_v1  ;;  %3730 = vst [vmem:[#allocation69_spill] sm:$0xff] %v3178_v55  ;;  %v3180_v56 = vld [vmem:[#allocation12 + $0x138] sm:$0xff]  ;;  %v3182_v52 = vld [vmem:[#allocation12 + $0x140] sm:$0xff] }
  0xec   :  { %3731 = vst [vmem:[#allocation70_spill] sm:$0xff] %v3180_v56  ;;  %3732 = vst [vmem:[#allocation71_spill] sm:$0xff] %v3182_v52  ;;  %v3184_v58 = vld [vmem:[#allocation12 + $0x148] sm:$0xff]  ;;  %v3186_v59 = vld [vmem:[#allocation12 + $0x150] sm:$0xff] }
  0xed   :  { %3733 = vst [vmem:[#allocation72_spill] sm:$0xff] %v3184_v58  ;;  %3734 = vst [vmem:[#allocation73_spill] sm:$0xff] %v3186_v59  ;;  %v3188_v60 = vld [vmem:[#allocation12 + $0x158] sm:$0xff]  ;;  %v3190_v61 = vld [vmem:[#allocation12 + $0x160] sm:$0xff] }
  0xee   :  { %3735 = vst [vmem:[#allocation74_spill] sm:$0xff] %v3188_v60  ;;  %3736 = vst [vmem:[#allocation75_spill] sm:$0xff] %v3190_v61  ;;  %v3192_v62 = vld [vmem:[#allocation12 + $0x168] sm:$0xff]  ;;  %v3194_v63 = vld [vmem:[#allocation12 + $0x170] sm:$0xff] }
  0xef   :  { %3737 = vst [vmem:[#allocation76_spill] sm:$0xff] %v3192_v62  ;;  %3738 = vst [vmem:[#allocation77_spill] sm:$0xff] %v3194_v63  ;;  %v3196_v0 = vld [vmem:[#allocation12 + $0x178] sm:$0xff]  ;;  %v3201_v55 = vld [vmem:[%s3642_s7] ss:$0 sm:$0xff] }
  0xf0   :  { %3739 = vst [vmem:[#allocation78_spill] sm:$0xff] %v3196_v0  ;;  %3740 = vst [vmem:[#allocation79_spill] sm:$0xff] %v3201_v55  ;;  %v3203_v56 = vld [vmem:[#allocation13] ss:$0 sm:$0xff]  ;;  %v197_v59 = vld [vmem:[#allocation5 + $0x20] sm:$0xff] }
  0xf1   :  { %3741 = vst [vmem:[#allocation80_spill] sm:$0xff] %v3203_v56  ;;  %v194_v58 = vld [vmem:[#allocation5 + $0x8] sm:$0xff]  ;;  %v195_v52 = vld [vmem:[#allocation5 + $0x10] sm:$0xff]  ;;  %v193_v57 = vld [vmem:[#allocation5] sm:$0xff] }
  0xf2   :  { %v198_v60 = vld [vmem:[#allocation5 + $0x28] sm:$0xff]  ;;  %v2102_v1 = vpack.c.bf16 %v197_v59, %v194_v58  ;;  %v196_v62 = vld [vmem:[#allocation5 + $0x18] sm:$0xff]  ;;  %v487_v55 = vld [vmem:[#allocation7 + $0x20] sm:$0xff] }
  0xf3   :  { %v2106_v61 = vpack.c.bf16 %v198_v60, %v195_v52  ;;  %v185_v0 = vld [vmem:[%s3742_s24] sm:$0xff]  ;;  %v2104_v63 = vpack.c.bf16 %v196_v62, %v193_v57  ;;  %v483_v46 = vld [vmem:[#allocation7] sm:$0xff]  ;;  %v186_v52 = vld [vmem:[%s3742_s24 + $0x8] sm:$0xff]  ;;  %v201_v60 = vlaneseq }
  0xf4   :  { %1901 = vmatprep.mubr.msk.f32.mxu1 %vm216_vm0, %v185_v0  ;;  %v484_v53 = vld [vmem:[#allocation7 + $0x8] sm:$0xff]  ;;  %2103 = vmatprep.subr.bf16.mxu0 %v2102_v1  ;;  %v485_v50 = vld [vmem:[#allocation7 + $0x10] sm:$0xff]  ;;  %v486_v59 = vld [vmem:[#allocation7 + $0x18] sm:$0xff] }
  0xf5   :  { %2107 = vmatprep.subr.bf16.mxu1 %v2106_v61  ;;  %v2110_v56 = vpack.c.bf16 %v487_v55, %v484_v53  ;;  %v488_v49 = vld [vmem:[#allocation7 + $0x28] sm:$0xff]  ;;  %2105 = vmatpush1.bf16.msra.mxu0 %v2104_v63  ;;  %v2112_v57 = vpack.c.bf16 %v486_v59, %v483_v46  ;;  %v187_v1 = vld [vmem:[%s3742_s24 + $0x10] sm:$0xff]  ;;  %v3743_v55 = vmov 0.0  }
  0xf6   :  { %2109 = vmatpush3.bf16.msra.mxu1 %v2106_v61  ;;  %v2114_v58 = vpack.c.bf16 %v488_v49, %v485_v50  ;;  %v188_v53 = vld [vmem:[%s3742_s24 + $0x18] sm:$0xff]  ;;  %v189_v46 = vld [vmem:[%s3742_s24 + $0x20] sm:$0xff]  ;;  %v190_v49 = vld [vmem:[%s3742_s24 + $0x28] sm:$0xff]  ;;  %v3276_v61 = vshrl.u32 %v201_v60, 7 }
  0xf7   :  { %2111 = vmatprep.subr.bf16.mxu1 %v2110_v56  ;;  %v191_v50 = vld [vmem:[%s3742_s24 + $0x30] sm:$0xff]  ;;  %v192_v56 = vld [vmem:[%s3742_s24 + $0x38] sm:$0xff] }
  0xf8   :  { %2115 = vmatprep.subr.bf16.mxu0 %v2114_v58  ;;  %1738 = vmatmul.mubr.msk.f32.vlgmr.msra.gmra.mrb[0].mxu0 %vm216_vm0, %v185_v0  ;;  %v203_v62 = vsub.s32 0, %v3276_v61  ;;  %v3670_v63 = vsub.s32 2, %v3276_v61 }
  0xf9   :  { %1902 = vmatmul.mubr.msk.f32.vlgmr.msra.gmra.mrb[0].mxu1 %vm216_vm0, %v186_v52  ;;  %2117 = vmatpush3.bf16.msra.mxu0 %v2114_v58 }
  0xfa   :  { %2113 = vmatpush1.bf16.msra.mxu1 %v2112_v57  ;;  %311 = vmatprep.mubr.f32.mxu0 %v3743_v55 }
  0xfb   :  { %1904 = vmatprep.mubr.msk.f32.mxu1 %vm216_vm0, %v187_v1 }
  0xfc   :  { %1739 = vmatmul.mubr.msk.f32.gmra.mrb[2].mxu0 %vm216_vm0, %v186_v52 }
  0xfd   :  { %1905 = vmatmul.mubr.msk.f32.gmra.mrb[2].mxu1 %vm216_vm0, %v188_v53  ;;  %317 = vmatprep.mubr.f32.mxu0 %v3743_v55 }
  0xfe   :  { %1907 = vmatprep.mubr.msk.f32.mxu1 %vm216_vm0, %v189_v46 }
 0x100   :  { %1740 = vmatmul.mubr.msk.f32.gmra.mrb[4].mxu0 %vm216_vm0, %v187_v1 }
 0x101   :  { %1908 = vmatmul.mubr.msk.f32.gmra.mrb[4].mxu1 %vm216_vm0, %v190_v49  ;;  %323 = vmatprep.mubr.f32.mxu0 %v3743_v55 }
 0x102   :  { %1910 = vmatprep.mubr.msk.f32.mxu1 %vm216_vm0, %v191_v50 }
 0x104   :  { %1741 = vmatmul.mubr.msk.f32.gmra.mrb[6].mxu0 %vm216_vm0, %v188_v53 }
 0x105   :  { %1911 = vmatmul.mubr.msk.f32.gmra.mrb[6].mxu1 %vm216_vm0, %v192_v56  ;;  %329 = vmatprep.mubr.f32.mxu0 %v3743_v55 }
 0x106   :  { %570 = vmatprep.mubr.f32.mxu1 %v3743_v55 }
 0x108   :  { %1742 = vmatmul.mubr.msk.f32.gmra.mrb[8].mxu0 %vm216_vm0, %v189_v46 }
 0x109   :  { %1754 = vmatmul.mubr.msk.f32.vlgmr.msra.gmra.mrb[8].mxu1 %vm216_vm0, %v185_v0  ;;  %335 = vmatprep.mubr.f32.mxu0 %v3743_v55 }
 0x10a   :  { %576 = vmatprep.mubr.f32.mxu1 %v3743_v55 }
 0x10c   :  { %1743 = vmatmul.mubr.msk.f32.gmra.mrb[10].mxu0 %vm216_vm0, %v190_v49 }
 0x10d   :  { %1755 = vmatmul.mubr.msk.f32.gmra.mrb[10].mxu1 %vm216_vm0, %v186_v52  ;;  %341 = vmatprep.mubr.f32.mxu0 %v3743_v55 }
 0x10e   :  { %582 = vmatprep.mubr.f32.mxu1 %v3743_v55 }
 0x110   :  { %1744 = vmatmul.mubr.msk.f32.gmra.mrb[12].mxu0 %vm216_vm0, %v191_v50 }
 0x111   :  { %1756 = vmatmul.mubr.msk.f32.gmra.mrb[12].mxu1 %vm216_vm0, %v187_v1  ;;  %347 = vmatprep.mubr.f32.mxu0 %v3743_v55 }
 0x112   :  { %588 = vmatprep.mubr.f32.mxu1 %v3743_v55 }
 0x114   :  { %1745 = vmatmul.mubr.msk.f32.gmra.mrb[14].mxu0 %vm216_vm0, %v192_v56 }
 0x115   :  { %1757 = vmatmul.mubr.msk.f32.gmra.mrb[14].mxu1 %vm216_vm0, %v188_v53  ;;  %1917 = vmatprep.mubr.msk.f32.mxu0 %vm216_vm0, %v185_v0  ;;  %v199_v0 = vld [vmem:[#allocation9] sm:$0x7] }
 0x116   :  { %594 = vmatprep.mubr.f32.mxu1 %v3743_v55  ;;  %v3281_v58 = vrot.slane %v199_v0, %v203_v62  ;;  %v212_v59 = vrot.slane %v199_v0, %v3670_v63 }
 0x118   :  { %1918 = vmatmul.mubr.msk.f32.vlgmr.msra.gmra.mrb[16].mxu0 %vm216_vm0, %v186_v52  ;;  %v207_v52 = vsub.s32 1, %v3276_v61 }
 0x119   :  { %1758 = vmatmul.mubr.msk.f32.gmra.mrb[16].mxu1 %vm216_vm0, %v189_v46  ;;  %1920 = vmatprep.mubr.msk.f32.mxu0 %vm216_vm0, %v187_v1 }
 0x11a   :  { %600 = vmatprep.mubr.f32.mxu1 %v3743_v55  ;;  %v3285_v57 = vrot.slane %v199_v0, %v207_v52 }
 0x11c   :  { %1921 = vmatmul.mubr.msk.f32.gmra.mrb[18].mxu0 %vm216_vm0, %v188_v53 }
 0x11d   :  { %1759 = vmatmul.mubr.msk.f32.gmra.mrb[18].mxu1 %vm216_vm0, %v190_v49  ;;  %1923 = vmatprep.mubr.msk.f32.mxu0 %vm216_vm0, %v189_v46 }
 0x11e   :  { %606 = vmatprep.mubr.f32.mxu1 %v3743_v55 }
 0x120   :  { %1924 = vmatmul.mubr.msk.f32.gmra.mrb[20].mxu0 %vm216_vm0, %v190_v49 }
 0x121   :  { %1760 = vmatmul.mubr.msk.f32.gmra.mrb[20].mxu1 %vm216_vm0, %v191_v50  ;;  %1926 = vmatprep.mubr.msk.f32.mxu0 %vm216_vm0, %v191_v50 }
 0x122   :  { %612 = vmatprep.mubr.f32.mxu1 %v3743_v55 }
 0x124   :  { %1927 = vmatmul.mubr.msk.f32.gmra.mrb[22].mxu0 %vm216_vm0, %v192_v56 }
 0x125   :  { %1761 = vmatmul.mubr.msk.f32.gmra.mrb[22].mxu1 %vm216_vm0, %v192_v56 }
 0x1cb   :  { %v307_v1 = vpop.f32.mrb[0].mxu0 }
 0x1cc   :  { %v1903_v53 = vpop.f32.mrb[0].mxu1  ;;  %v308_v55 = vadd.f32 %v307_v1, %v3281_v58  ;;  %v309_v49 = vpop.f32.mrb[1].mxu0 }
 0x1cd   :  { %v426_v46 = vadd.f32 %v1903_v53, %v212_v59  ;;  %v420_v50 = vpop.f32.mrb[1].mxu1  ;;  %v310_v56 = vadd.f32 %v309_v49, %v3285_v57 }
 0x1ce   :  { %v421_v60 = vadd.f32 %v420_v50, %v212_v59  ;;  %459 = vst [vmem:[#allocation2] sm:$0xff] %v308_v55 }
 0x1cf   :  { %464 = vst [vmem:[#allocation2 + $0x28] sm:$0xff] %v426_v46  ;;  %460 = vst [vmem:[#allocation2 + $0x8] sm:$0xff] %v310_v56  ;;  %v313_v54 = vpop.f32.mrb[2].mxu0 }
 0x1d0   :  { %461 = vst [vmem:[#allocation2 + $0x10] sm:$0xff] %v421_v60  ;;  %v1906_v51 = vpop.f32.mrb[2].mxu1  ;;  %v314_v63 = vadd.f32 %v313_v54, %v3281_v58  ;;  %v315_v47 = vpop.f32.mrb[3].mxu0 }
 0x1d1   :  { %v436_v0 = vadd.f32 %v1906_v51, %v212_v59  ;;  %v430_v44 = vpop.f32.mrb[3].mxu1  ;;  %v316_v43 = vadd.f32 %v315_v47, %v3285_v57  ;;  %v489_v51 = vld [vmem:[#allocation10] sm:$0x7] }
 0x1d2   :  { %v431_v1 = vadd.f32 %v430_v44, %v212_v59  ;;  %462 = vst [vmem:[#allocation2 + $0x18] sm:$0xff] %v314_v63  ;;  %v3294_v40 = vrot.slane %v489_v51, %v203_v62  ;;  %v3297_v48 = vrot.slane %v489_v51, %v207_v52 }
 0x1d3   :  { %470 = vst [vmem:[#allocation2 + $0x58] sm:$0xff] %v436_v0  ;;  %463 = vst [vmem:[#allocation2 + $0x20] sm:$0xff] %v316_v43  ;;  %v319_v53 = vpop.f32.mrb[4].mxu0 }
 0x1d4   :  { %467 = vst [vmem:[#allocation2 + $0x40] sm:$0xff] %v431_v1  ;;  %v1909_v49 = vpop.f32.mrb[4].mxu1  ;;  %v320_v55 = vadd.f32 %v319_v53, %v3281_v58  ;;  %v321_v50 = vpop.f32.mrb[5].mxu0 }
 0x1d5   :  { %v446_v46 = vadd.f32 %v1909_v49, %v212_v59  ;;  %v440_v56 = vpop.f32.mrb[5].mxu1  ;;  %v322_v60 = vadd.f32 %v321_v50, %v3285_v57 }
 0x1d6   :  { %v441_v54 = vadd.f32 %v440_v56, %v212_v59  ;;  %465 = vst [vmem:[#allocation2 + $0x30] sm:$0xff] %v320_v55 }
 0x1d7   :  { %476 = vst [vmem:[#allocation2 + $0x88] sm:$0xff] %v446_v46  ;;  %466 = vst [vmem:[#allocation2 + $0x38] sm:$0xff] %v322_v60  ;;  %v325_v44 = vpop.f32.mrb[6].mxu0 }
 0x1d8   :  { %473 = vst [vmem:[#allocation2 + $0x70] sm:$0xff] %v441_v54  ;;  %v1912_v47 = vpop.f32.mrb[6].mxu1  ;;  %v326_v43 = vadd.f32 %v325_v44, %v3281_v58  ;;  %v327_v0 = vpop.f32.mrb[7].mxu0 }
 0x1d9   :  { %v456_v63 = vadd.f32 %v1912_v47, %v212_v59  ;;  %v450_v1 = vpop.f32.mrb[7].mxu1  ;;  %v328_v53 = vadd.f32 %v327_v0, %v3285_v57 }
 0x1da   :  { %v451_v49 = vadd.f32 %v450_v1, %v212_v59  ;;  %468 = vst [vmem:[#allocation2 + $0x48] sm:$0xff] %v326_v43 }
 0x1db   :  { %482 = vst [vmem:[#allocation2 + $0xb8] sm:$0xff] %v456_v63  ;;  %469 = vst [vmem:[#allocation2 + $0x50] sm:$0xff] %v328_v53  ;;  %v331_v55 = vpop.f32.mrb[8].mxu0 }
 0x1dc   :  { %479 = vst [vmem:[#allocation2 + $0xa0] sm:$0xff] %v451_v49  ;;  %v572_v46 = vpop.f32.mrb[8].mxu1  ;;  %v332_v50 = vadd.f32 %v331_v55, %v3281_v58  ;;  %v333_v60 = vpop.f32.mrb[9].mxu0 }
 0x1dd   :  { %v573_v56 = vadd.f32 %v572_v46, %v3294_v40  ;;  %v574_v54 = vpop.f32.mrb[9].mxu1  ;;  %v334_v62 = vadd.f32 %v333_v60, %v3285_v57 }
 0x1de   :  { %v575_v44 = vadd.f32 %v574_v54, %v3297_v48  ;;  %471 = vst [vmem:[#allocation2 + $0x60] sm:$0xff] %v332_v50 }
 0x1df   :  { %724 = vst [vmem:[#allocation3] sm:$0xff] %v573_v56  ;;  %472 = vst [vmem:[#allocation2 + $0x68] sm:$0xff] %v334_v62  ;;  %v337_v52 = vpop.f32.mrb[10].mxu0 }
 0x1e0   :  { %725 = vst [vmem:[#allocation3 + $0x8] sm:$0xff] %v575_v44  ;;  %v578_v59 = vpop.f32.mrb[10].mxu1  ;;  %v338_v47 = vadd.f32 %v337_v52, %v3281_v58  ;;  %v339_v63 = vpop.f32.mrb[11].mxu0 }
 0x1e1   :  { %v579_v43 = vadd.f32 %v578_v59, %v3294_v40  ;;  %v580_v0 = vpop.f32.mrb[11].mxu1  ;;  %v340_v1 = vadd.f32 %v339_v63, %v3285_v57 }
 0x1e2   :  { %v581_v53 = vadd.f32 %v580_v0, %v3297_v48  ;;  %474 = vst [vmem:[#allocation2 + $0x78] sm:$0xff] %v338_v47  ;;  %v3744_v0 = vsub.s32 2, %v3276_v61 }
 0x1e3   :  { %727 = vst [vmem:[#allocation3 + $0x18] sm:$0xff] %v579_v43  ;;  %475 = vst [vmem:[#allocation2 + $0x80] sm:$0xff] %v340_v1  ;;  %v343_v49 = vpop.f32.mrb[12].mxu0 }
 0x1e4   :  { %728 = vst [vmem:[#allocation3 + $0x20] sm:$0xff] %v581_v53  ;;  %v584_v55 = vpop.f32.mrb[12].mxu1  ;;  %v344_v46 = vadd.f32 %v343_v49, %v3281_v58  ;;  %v345_v56 = vpop.f32.mrb[13].mxu0  ;;  %v502_v1 = vrot.slane %v489_v51, %v3744_v0 }
 0x1e5   :  { %v585_v50 = vadd.f32 %v584_v55, %v3294_v40  ;;  %v586_v60 = vpop.f32.mrb[13].mxu1  ;;  %v346_v54 = vadd.f32 %v345_v56, %v3285_v57 }
 0x1e6   :  { %v587_v62 = vadd.f32 %v586_v60, %v3297_v48  ;;  %477 = vst [vmem:[#allocation2 + $0x90] sm:$0xff] %v344_v46 }
 0x1e7   :  { %730 = vst [vmem:[#allocation3 + $0x30] sm:$0xff] %v585_v50  ;;  %478 = vst [vmem:[#allocation2 + $0x98] sm:$0xff] %v346_v54  ;;  %v349_v44 = vpop.f32.mrb[14].mxu0 }
 0x1e8   :  { %731 = vst [vmem:[#allocation3 + $0x38] sm:$0xff] %v587_v62  ;;  %v590_v52 = vpop.f32.mrb[14].mxu1  ;;  %v350_v59 = vadd.f32 %v349_v44, %v3281_v58  ;;  %v351_v43 = vpop.f32.mrb[15].mxu0 }
 0x1e9   :  { %v591_v47 = vadd.f32 %v590_v52, %v3294_v40  ;;  %v592_v63 = vpop.f32.mrb[15].mxu1  ;;  %v352_v53 = vadd.f32 %v351_v43, %v3285_v57 }
 0x1ea   :  { %v593_v49 = vadd.f32 %v592_v63, %v3297_v48  ;;  %480 = vst [vmem:[#allocation2 + $0xa8] sm:$0xff] %v350_v59 }
 0x1eb   :  { %733 = vst [vmem:[#allocation3 + $0x48] sm:$0xff] %v591_v47  ;;  %481 = vst [vmem:[#allocation2 + $0xb0] sm:$0xff] %v352_v53  ;;  %v1919_v46 = vpop.f32.mrb[16].mxu0 }
 0x1ec   :  { %734 = vst [vmem:[#allocation3 + $0x50] sm:$0xff] %v593_v49  ;;  %v596_v55 = vpop.f32.mrb[16].mxu1  ;;  %v691_v58 = vadd.f32 %v1919_v46, %v502_v1  ;;  %v685_v60 = vpop.f32.mrb[17].mxu0 }
 0x1ed   :  { %v597_v50 = vadd.f32 %v596_v55, %v3294_v40  ;;  %v598_v56 = vpop.f32.mrb[17].mxu1  ;;  %v686_v62 = vadd.f32 %v685_v60, %v502_v1 }
 0x1ee   :  { %v599_v54 = vadd.f32 %v598_v56, %v3297_v48  ;;  %729 = vst [vmem:[#allocation3 + $0x28] sm:$0xff] %v691_v58 }
 0x1ef   :  { %736 = vst [vmem:[#allocation3 + $0x60] sm:$0xff] %v597_v50  ;;  %726 = vst [vmem:[#allocation3 + $0x10] sm:$0xff] %v686_v62  ;;  %v1922_v57 = vpop.f32.mrb[18].mxu0 }
 0x1f0   :  { %737 = vst [vmem:[#allocation3 + $0x68] sm:$0xff] %v599_v54  ;;  %v602_v61 = vpop.f32.mrb[18].mxu1  ;;  %v701_v44 = vadd.f32 %v1922_v57, %v502_v1  ;;  %v695_v59 = vpop.f32.mrb[19].mxu0 }
 0x1f1   :  { %v603_v51 = vadd.f32 %v602_v61, %v3294_v40  ;;  %v604_v52 = vpop.f32.mrb[19].mxu1  ;;  %v696_v43 = vadd.f32 %v695_v59, %v502_v1  ;;  %v3327_v59 = vmov 0.0  }
 0x1f2   :  { %v605_v47 = vadd.f32 %v604_v52, %v3297_v48  ;;  %735 = vst [vmem:[#allocation3 + $0x58] sm:$0xff] %v701_v44  ;;  %v3325_v52 = vmov 0.0  }
 0x1f3   :  { %739 = vst [vmem:[#allocation3 + $0x78] sm:$0xff] %v603_v51  ;;  %732 = vst [vmem:[#allocation3 + $0x40] sm:$0xff] %v696_v43  ;;  %v1925_v0 = vpop.f32.mrb[20].mxu0 }
 0x1f4   :  { %740 = vst [vmem:[#allocation3 + $0x80] sm:$0xff] %v605_v47  ;;  %v608_v63 = vpop.f32.mrb[20].mxu1  ;;  %v711_v49 = vadd.f32 %v1925_v0, %v502_v1  ;;  %v705_v46 = vpop.f32.mrb[21].mxu0 }
 0x1f5   :  { %v609_v53 = vadd.f32 %v608_v63, %v3294_v40  ;;  %v610_v55 = vpop.f32.mrb[21].mxu1  ;;  %v706_v58 = vadd.f32 %v705_v46, %v502_v1 }
 0x1f6   :  { %v611_v50 = vadd.f32 %v610_v55, %v3297_v48  ;;  %741 = vst [vmem:[#allocation3 + $0x88] sm:$0xff] %v711_v49 }
 0x1f7   :  { %742 = vst [vmem:[#allocation3 + $0x90] sm:$0xff] %v609_v53  ;;  %738 = vst [vmem:[#allocation3 + $0x70] sm:$0xff] %v706_v58  ;;  %v1928_v60 = vpop.f32.mrb[22].mxu0 }
 0x1f8   :  { %743 = vst [vmem:[#allocation3 + $0x98] sm:$0xff] %v611_v50  ;;  %v614_v56 = vpop.f32.mrb[22].mxu1  ;;  %v721_v62 = vadd.f32 %v1928_v60, %v502_v1  ;;  %v715_v57 = vpop.f32.mrb[23].mxu0 }
 0x1f9   :  { %v615_v54 = vadd.f32 %v614_v56, %v3294_v40  ;;  %v616_v61 = vpop.f32.mrb[23].mxu1  ;;  %v716_v44 = vadd.f32 %v715_v57, %v502_v1 }
 0x1fa   :  { %v617_v51 = vadd.f32 %v616_v61, %v3297_v48  ;;  %747 = vst [vmem:[#allocation3 + $0xb8] sm:$0xff] %v721_v62 }
 0x1fb   :  { %745 = vst [vmem:[#allocation3 + $0xa8] sm:$0xff] %v615_v54  ;;  %744 = vst [vmem:[#allocation3 + $0xa0] sm:$0xff] %v716_v44 }
 0x1fc   :  { %746 = vst [vmem:[#allocation3 + $0xb0] sm:$0xff] %v617_v51 }
 0x1fd LB: > { %v2118_v40 = vpack.c.bf16 %v2885_v6, %v2870_v3  ;;  %v2120_v48 = vpack.c.bf16 %v2880_v5, %v2865_v2  ;;  %v2122_v1 = vpack.c.bf16 %v2915_v12, %v2900_v9  ;;  %v2124_v47 = vpack.c.bf16 %v2910_v11, %v2895_v8  ;;  %s1772_s6 = sshll.u32 %s2597_s28, 3  ;;  %s867_s16 = ssub.s32 7, %s2597_s28  ;;  %s2597_s28 = sphi %s3329_s28, %s863_s28   ;;  %v2593_v59 = vphi %v3327_v59, %v3803_v59   ;;  %v2589_v52 = vphi %v3325_v52, %v3802_v52  }
 0x1fe   : > { %v2151_v43 = vpack.c.bf16 %v2890_v7, %v2875_v4  ;;  %v2126_v63 = vpack.c.bf16 %v2945_v18, %v2930_v15  ;;  %v2613_v0 = vmov 0.0|0.0   ;;  %v2154_v53 = vpack.c.bf16 %v2920_v13, %v2905_v10  ;;  %s869_s25 = sshra.s32 %s1772_s6, 3  ;;  %s1773_s24 = sshll.u32 %s867_s16, 3 }
 0x1ff   : > { %2119 = vmatprep.subr.bf16.mxu0 %v2118_v40  ;;  %2150 = vmatprep.subr.bf16.mxu1 %v2613_v0  ;;  %v2614_v49 = vmov 0.0   ;;  %v2128_v55 = vpack.c.bf16 %v2940_v17, %v2925_v14  ;;  %v2130_v46 = vpack.c.bf16 %v2975_v24, %v2960_v21  ;;  %v2157_v50 = vpack.c.bf16 %v2950_v19, %v2935_v16  ;;  %s1792_s27 = smul.u32 24, %s869_s25  ;;  %s877_s7 = sshra.s32 %s1773_s24, 3 }
 0x200   : > { %2121 = vmatpush1.bf16.msra.mxu0 %v2120_v48  ;;  %2152 = vmatpush3.bf16.msra.mxu1 %v2151_v43  ;;  %v2132_v58 = vpack.c.bf16 %v2970_v23, %v2955_v20  ;;  %vm2615_vm1 = vmmov 0   ;;  %v2134_v56 = vpack.c.bf16 %v3005_v30, %v2990_v27  ;;  %v2160_v60 = vpack.c.bf16 %v2980_v25, %v2965_v22  ;;  %v3745_v48 = vld [vmem:[#allocation29_spill] sm:$0xff]  ;;  %s1793_s2 = smul.u32 24, %s877_s7  ;;  %s863_s28 = sadd.s32 1, %s2597_s28  }
 0x201   : > { %2123 = vmatprep.subr.bf16.mxu0 %v2122_v1  ;;  %949 = vmatprep.mubr.f32.mxu0 %v2614_v49  ;;  %v2136_v54 = vpack.c.bf16 %v3000_v29, %v2985_v26  ;;  %v2138_v62 = vpack.c.bf16 %v3035_v36, %v3020_v33  ;;  %v2163_v61 = vpack.c.bf16 %v3010_v31, %v2995_v28  ;;  %v3747_v43 = vld [vmem:[#allocation25_spill] sm:$0xff]  ;;  %s873_s3 = scalar_lea.vmem [#allocation2], %s1792_s27  ;;  %p860_p2 = scmp.ge.s32.totalorder %s863_s28, 8  }
 0x202   : > { %2153 = vmatprep.subr.bf16.mxu1 %v2613_v0  ;;  %1961 = vmatprep.mubr.msk.f32.mxu1 %vm2615_vm1, %v2614_v49  ;;  %v2140_v57 = vpack.c.bf16 %v3030_v35, %v3015_v32  ;;  %v2142_v51 = vpack.c.bf16 %v3065_v42, %v3050_v39  ;;  %v2166_v44 = vpack.c.bf16 %v3040_v37, %v3025_v34  ;;  %s881_s29 = scalar_lea.vmem [#allocation3], %s1793_s2  ;;  %vm2617_vm2 = vmmov (%p860_p2), 0   ;;  %v1375_v3 = vld [vmem:[%s3647_s12 + $0x10] sm:$0xff] (%p860_p2)  ;;  %v1357_v4 = vld [vmem:[%s3646_s11] sm:$0xff] (%p860_p2)  ;;  %v1358_v5 = vld [vmem:[%s3646_s11 + $0x8] sm:$0xff] (%p860_p2) }
 0x203   : > { %v2144_v40 = vpack.c.bf16 %v3060_v41, %v3045_v38  ;;  %v2146_v1 = vpack.c.bf16 %v3745_v48, %v3080_v45  ;;  %v1376_v6 = vld [vmem:[%s3647_s12 + $0x18] sm:$0xff] (%p860_p2)  ;;  %v1377_v8 = vld [vmem:[%s3647_s12 + $0x20] sm:$0xff] (%p860_p2)  ;;  %v1378_v9 = vld [vmem:[%s3647_s12 + $0x28] sm:$0xff] (%p860_p2)  ;;  %v2261_v11 = vpack.c.bf16 (%p860_p2), %v1358_v5, %v1357_v4  ;;  %vm1540_vm3 = vcmask (%p860_p2), 523264  }
 0x204   : > { %2125 = vmatpush1.bf16.msra.mxu0 %v2124_v47  ;;  %2155 = vmatpush3.bf16.msra.mxu1 %v2154_v53  ;;  %v3746_v47 = vld [vmem:[#allocation24_spill] sm:$0xff]  ;;  %v3748_v53 = vld [vmem:[#allocation26_spill] sm:$0xff]  ;;  %v2240_v7 = vpack.c.bf16 (%p860_p2), %v1376_v6, %v1375_v3  ;;  %v1283_v10 = vld [vmem:[#allocation16] sm:$0xff] (%p860_p2)  ;;  %v2243_v14 = vpack.c.bf16 (%p860_p2), %v1378_v9, %v1377_v8  ;;  %vm1712_vm4 = vcmask (%p860_p2), 7168  }
 0x205   : > { %2127 = vmatprep.subr.bf16.mxu0 %v2126_v63  ;;  %2156 = vmatprep.subr.bf16.mxu1 %v2613_v0  ;;  %v2169_v63 = vpack.c.bf16 %v3747_v43, %v3746_v47  ;;  %v3758_v47 = vld [vmem:[#allocation33_spill] sm:$0xff]  ;;  %v1359_v12 = vld [vmem:[%s3646_s11 + $0x10] sm:$0xff] (%p860_p2)  ;;  %v1360_v13 = vld [vmem:[%s3646_s11 + $0x18] sm:$0xff] (%p860_p2) }
 0x206   :  { %v1379_v15 = vld [vmem:[%s3647_s12 + $0x30] sm:$0xff] (%p860_p2)  ;;  %v1380_v16 = vld [vmem:[%s3647_s12 + $0x38] sm:$0xff] (%p860_p2)  ;;  %v2264_v17 = vpack.c.bf16 (%p860_p2), %v1360_v13, %v1359_v12  ;;  %v1361_v18 = vld [vmem:[%s3646_s11 + $0x20] sm:$0xff] (%p860_p2) }
 0x207   :  { %v1362_v19 = vld [vmem:[%s3646_s11 + $0x28] sm:$0xff] (%p860_p2)  ;;  %v2246_v20 = vpack.c.bf16 (%p860_p2), %v1380_v16, %v1379_v15  ;;  %v1381_v21 = vld [vmem:[%s3647_s12 + $0x40] sm:$0xff] (%p860_p2)  ;;  %v1363_v24 = vld [vmem:[%s3646_s11 + $0x30] sm:$0xff] (%p860_p2) }
 0x208   : > { %2129 = vmatpush1.bf16.msra.mxu0 %v2128_v55  ;;  %2158 = vmatpush3.bf16.msra.mxu1 %v2157_v50  ;;  %v3749_v55 = vld [vmem:[#allocation28_spill] sm:$0xff]  ;;  %v1382_v22 = vld [vmem:[%s3647_s12 + $0x48] sm:$0xff] (%p860_p2)  ;;  %v2267_v23 = vpack.c.bf16 (%p860_p2), %v1362_v19, %v1361_v18  ;;  %v1383_v27 = vld [vmem:[%s3647_s12 + $0x50] sm:$0xff] (%p860_p2) }
 0x209   : > { %2131 = vmatprep.subr.bf16.mxu0 %v2130_v46  ;;  %2159 = vmatprep.subr.bf16.mxu1 %v2613_v0  ;;  %v2148_v46 = vpack.c.bf16 %v3749_v55, %v3748_v53  ;;  %v3750_v50 = vld [vmem:[#allocation32_spill] sm:$0xff]  ;;  %v2249_v26 = vpack.c.bf16 (%p860_p2), %v1382_v22, %v1381_v21  ;;  %v1366_v31 = vld [vmem:[%s3646_s11 + $0x48] sm:$0xff] (%p860_p2)  ;;  %v1367_v36 = vld [vmem:[%s3646_s11 + $0x50] sm:$0xff] (%p860_p2) }
 0x20a   : > { %v3761_v53 = vld [vmem:[#allocation40_spill] sm:$0xff]  ;;  %v1386_v34 = vld [vmem:[%s3647_s12 + $0x68] sm:$0xff] (%p860_p2)  ;;  %v1572_v8 = vld [vmem:[#allocation18 + $0x18] sm:$0xff] (%p860_p2) }
 0x20b   :  { %v1364_v25 = vld [vmem:[%s3646_s11 + $0x38] sm:$0xff] (%p860_p2)  ;;  %v1365_v30 = vld [vmem:[%s3646_s11 + $0x40] sm:$0xff] (%p860_p2)  ;;  %v1370_v42 = vld [vmem:[%s3646_s11 + $0x68] sm:$0xff] (%p860_p2) }
 0x20c   : > { %2133 = vmatpush1.bf16.msra.mxu0 %v2132_v58  ;;  %2161 = vmatpush3.bf16.msra.mxu1 %v2160_v60  ;;  %v3751_v58 = vld [vmem:[#allocation35_spill] sm:$0xff]  ;;  %v2270_v29 = vpack.c.bf16 (%p860_p2), %v1364_v25, %v1363_v24  ;;  %v1385_v33 = vld [vmem:[%s3647_s12 + $0x60] sm:$0xff] (%p860_p2)  ;;  %v2273_v35 = vpack.c.bf16 (%p860_p2), %v1366_v31, %v1365_v30  ;;  %v1575_v13 = vld [vmem:[#allocation18 + $0x30] sm:$0xff] (%p860_p2) }
 0x20d   : > { %2135 = vmatprep.subr.bf16.mxu0 %v2134_v56  ;;  %2162 = vmatprep.subr.bf16.mxu1 %v2613_v0  ;;  %v2174_v56 = vpack.c.bf16 %v3751_v58, %v3750_v50  ;;  %v3752_v60 = vld [vmem:[#allocation27_spill] sm:$0xff]  ;;  %v2255_v38 = vpack.c.bf16 (%p860_p2), %v1386_v34, %v1385_v33  ;;  %v1369_v41 = vld [vmem:[%s3646_s11 + $0x60] sm:$0xff] (%p860_p2) }
 0x20e   : > { %v3763_v50 = vld [vmem:[#allocation47_spill] sm:$0xff]  ;;  %v2279_v45 = vpack.c.bf16 (%p860_p2), %v1370_v42, %v1369_v41  ;;  %v1569_v4 = vld [vmem:[#allocation18] sm:$0xff] (%p860_p2)  ;;  %v1570_v5 = vld [vmem:[#allocation18 + $0x8] sm:$0xff] (%p860_p2) }
 0x20f   :  { %v1384_v28 = vld [vmem:[%s3647_s12 + $0x58] sm:$0xff] (%p860_p2)  ;;  %v2285_v6 = vpack.c.bf16 (%p860_p2), %v1570_v5, %v1569_v4  ;;  %v1784_v22 = vld [vmem:[%s3650_s15] ss:$0 sm:$0xff] (%p860_p2) }
 0x210   : > { %2137 = vmatpush1.bf16.msra.mxu0 %v2136_v54  ;;  %2164 = vmatpush3.bf16.msra.mxu1 %v2163_v61  ;;  %v3753_v54 = vld [vmem:[#allocation30_spill] sm:$0xff]  ;;  %v3754_v61 = vld [vmem:[#allocation31_spill] sm:$0xff]  ;;  %v2252_v32 = vpack.c.bf16 (%p860_p2), %v1384_v28, %v1383_v27  ;;  %v1785_v24 = vld [vmem:[%s3652_s17] ss:$0 sm:$0xff] (%p860_p2) }
 0x211   : > { %2139 = vmatprep.subr.bf16.mxu0 %v2138_v62  ;;  %2165 = vmatprep.subr.bf16.mxu1 %v2613_v0  ;;  %v2172_v62 = vpack.c.bf16 %v3753_v54, %v3752_v60  ;;  %v3765_v60 = vld [vmem:[#allocation42_spill] sm:$0xff]  ;;  %v1368_v37 = vld [vmem:[%s3646_s11 + $0x58] sm:$0xff] (%p860_p2)  ;;  %v1788_v42 = vld [vmem:[%s3654_s19] ss:$0 sm:$0xff] (%p860_p2) }
 0x212   :  { %v2276_v39 = vpack.c.bf16 (%p860_p2), %v1368_v37, %v1367_v36 }
 0x214   : > { %2141 = vmatpush1.bf16.msra.mxu0 %v2140_v57  ;;  %2167 = vmatpush3.bf16.msra.mxu1 %v2166_v44  ;;  %v3755_v57 = vld [vmem:[#allocation34_spill] sm:$0xff] }
 0x215   : > { %2143 = vmatprep.subr.bf16.mxu0 %v2142_v51  ;;  %2168 = vmatprep.subr.bf16.mxu1 %v2613_v0  ;;  %v2176_v51 = vpack.c.bf16 %v3755_v57, %v3754_v61  ;;  %v3756_v44 = vld [vmem:[#allocation38_spill] sm:$0xff] }
 0x216   : > { %v3767_v61 = vld [vmem:[#allocation46_spill] sm:$0xff] }
 0x218   : > { %2145 = vmatpush1.bf16.msra.mxu0 %v2144_v40  ;;  %2170 = vmatpush3.bf16.msra.mxu1 %v2169_v63  ;;  %v3757_v40 = vld [vmem:[#allocation41_spill] sm:$0xff] }
 0x219   : > { %2147 = vmatprep.subr.bf16.mxu0 %v2146_v1  ;;  %2171 = vmatprep.subr.bf16.mxu1 %v2613_v0  ;;  %v2178_v48 = vpack.c.bf16 %v3757_v40, %v3756_v44  ;;  %v3759_v1 = vld [vmem:[#allocation36_spill] sm:$0xff]  ;;  %v3760_v63 = vld [vmem:[#allocation37_spill] sm:$0xff] }
 0x21a   : > { %v2207_v43 = vpack.c.bf16 %v3759_v1, %v3758_v47  ;;  %v2180_v55 = vpack.c.bf16 %v3761_v53, %v3760_v63  ;;  %v3769_v44 = vld [vmem:[#allocation53_spill] sm:$0xff]  ;;  %v3771_v47 = vld [vmem:[#allocation48_spill] sm:$0xff] }
 0x21b   : > { %v3773_v63 = vld [vmem:[#allocation52_spill] sm:$0xff] }
 0x21c   : > { %2149 = vmatpush1.bf16.msra.mxu0 %v2148_v46  ;;  %2173 = vmatpush3.bf16.msra.mxu1 %v2172_v62  ;;  %v3762_v46 = vld [vmem:[#allocation44_spill] sm:$0xff]  ;;  %v3766_v62 = vld [vmem:[#allocation43_spill] sm:$0xff] }
 0x21d   : > { %2175 = vmatprep.subr.bf16.mxu0 %v2174_v56  ;;  %2206 = vmatprep.subr.bf16.mxu1 %v2613_v0  ;;  %v2182_v58 = vpack.c.bf16 %v3763_v50, %v3762_v46  ;;  %v3764_v56 = vld [vmem:[#allocation39_spill] sm:$0xff]  ;;  %v2184_v57 = vpack.c.bf16 %v3767_v61, %v3766_v62  ;;  %v3774_v53 = vld [vmem:[#allocation56_spill] sm:$0xff]  ;;  %v3780_v61 = vld [vmem:[#allocation62_spill] sm:$0xff] }
 0x21e   : > { %v2210_v54 = vpack.c.bf16 %v3765_v60, %v3764_v56  ;;  %v3776_v50 = vld [vmem:[#allocation51_spill] sm:$0xff] }
 0x21f   : > { %950 = vmatmul.mubr.f32.vlgmr.msra.gmra.mrb[0].mxu0 %v2593_v59  ;;  %1962 = vmatmul.mubr.f32.vlgmr.msra.gmra.mrb[0].mxu1 %v2593_v59  ;;  %v3778_v60 = vld [vmem:[#allocation55_spill] sm:$0xff] }
 0x220   : > { %2177 = vmatpush1.bf16.msra.mxu0 %v2176_v51  ;;  %1111 = vmatprep.mubr.f32.mxu0 %v2614_v49  ;;  %v3768_v51 = vld [vmem:[#allocation50_spill] sm:$0xff] }
 0x221   : > { %2179 = vmatprep.subr.bf16.mxu0 %v2178_v48  ;;  %2208 = vmatpush3.bf16.msra.mxu1 %v2207_v43  ;;  %v2186_v40 = vpack.c.bf16 %v3769_v44, %v3768_v51  ;;  %v3770_v48 = vld [vmem:[#allocation45_spill] sm:$0xff] }
 0x222   : > { %1996 = vmatprep.mubr.msk.f32.mxu1 %vm2615_vm1, %v2614_v49  ;;  %2209 = vmatprep.subr.bf16.mxu1 %v2613_v0  ;;  %v2213_v1 = vpack.c.bf16 %v3771_v47, %v3770_v48  ;;  %v3772_v43 = vld [vmem:[#allocation49_spill] sm:$0xff] }
 0x223   : > { %v2188_v49 = vpack.c.bf16 %v3773_v63, %v3772_v43  ;;  %v3782_v44 = vld [vmem:[#allocation57_spill] sm:$0xff]  ;;  %v3786_v63 = vld [vmem:[#allocation68_spill] sm:$0xff] }
 0x224   : > { %2181 = vmatpush1.bf16.msra.mxu0 %v2180_v55  ;;  %v3775_v55 = vld [vmem:[#allocation59_spill] sm:$0xff]  ;;  %v3784_v47 = vld [vmem:[#allocation61_spill] sm:$0xff] }
 0x225   : > { %2183 = vmatprep.subr.bf16.mxu0 %v2182_v58  ;;  %2211 = vmatpush3.bf16.msra.mxu1 %v2210_v54  ;;  %v2190_v46 = vpack.c.bf16 %v3775_v55, %v3774_v53  ;;  %v3777_v58 = vld [vmem:[#allocation54_spill] sm:$0xff]  ;;  %v3788_v55 = vld [vmem:[#allocation63_spill] sm:$0xff] }
 0x226   : > { %2212 = vmatprep.subr.bf16.mxu1 %v2613_v0  ;;  %v2216_v56 = vpack.c.bf16 %v3777_v58, %v3776_v50  ;;  %v3779_v54 = vld [vmem:[#allocation58_spill] sm:$0xff]  ;;  %v3790_v58 = vld [vmem:[#allocation67_spill] sm:$0xff] }
 0x227   : > { %v2192_v62 = vpack.c.bf16 %v3779_v54, %v3778_v60  ;;  %v3792_v54 = vld [vmem:[#allocation74_spill] sm:$0xff] }
 0x228   : > { %2185 = vmatpush1.bf16.msra.mxu0 %v2184_v57  ;;  %v3781_v57 = vld [vmem:[#allocation65_spill] sm:$0xff] }
 0x229   : > { %2187 = vmatprep.subr.bf16.mxu0 %v2186_v40  ;;  %2214 = vmatpush3.bf16.msra.mxu1 %v2213_v1  ;;  %v2194_v51 = vpack.c.bf16 %v3781_v57, %v3780_v61  ;;  %v3783_v40 = vld [vmem:[#allocation60_spill] sm:$0xff]  ;;  %v3794_v57 = vld [vmem:[#allocation69_spill] sm:$0xff] }
 0x22a   : > { %2215 = vmatprep.subr.bf16.mxu1 %v2613_v0  ;;  %v2219_v48 = vpack.c.bf16 %v3783_v40, %v3782_v44  ;;  %v3785_v1 = vld [vmem:[#allocation64_spill] sm:$0xff]  ;;  %v3796_v40 = vld [vmem:[#allocation73_spill] sm:$0xff] }
 0x22b   : > { %v2196_v43 = vpack.c.bf16 %v3785_v1, %v3784_v47  ;;  %v3798_v1 = vld [vmem:[#allocation75_spill] sm:$0xff] }
 0x22c   : > { %2189 = vmatpush1.bf16.msra.mxu0 %v2188_v49  ;;  %v3787_v49 = vld [vmem:[#allocation71_spill] sm:$0xff] }
 0x22d   : > { %2191 = vmatprep.subr.bf16.mxu0 %v2190_v46  ;;  %2217 = vmatpush3.bf16.msra.mxu1 %v2216_v56  ;;  %v2198_v53 = vpack.c.bf16 %v3787_v49, %v3786_v63  ;;  %v3789_v46 = vld [vmem:[#allocation66_spill] sm:$0xff]  ;;  %v874_v49 = vld [vmem:[%s873_s3] sm:$0xff] }
 0x22e   : > { %2218 = vmatprep.subr.bf16.mxu1 %v2613_v0  ;;  %v2222_v50 = vpack.c.bf16 %v3789_v46, %v3788_v55  ;;  %v3791_v56 = vld [vmem:[#allocation70_spill] sm:$0xff] }
 0x22f   : > { %v2200_v60 = vpack.c.bf16 %v3791_v56, %v3790_v58 }
 0x230   : > { %2193 = vmatpush1.bf16.msra.mxu0 %v2192_v62  ;;  %v3793_v62 = vld [vmem:[#allocation77_spill] sm:$0xff] }
 0x231   : > { %2195 = vmatprep.subr.bf16.mxu0 %v2194_v51  ;;  %2220 = vmatpush3.bf16.msra.mxu1 %v2219_v48  ;;  %v2202_v61 = vpack.c.bf16 %v3793_v62, %v3792_v54  ;;  %v3795_v51 = vld [vmem:[#allocation72_spill] sm:$0xff] }
 0x232   : > { %2221 = vmatprep.subr.bf16.mxu1 %v2613_v0  ;;  %v2225_v44 = vpack.c.bf16 %v3795_v51, %v3794_v57  ;;  %v3797_v48 = vld [vmem:[#allocation76_spill] sm:$0xff]  ;;  %v3800_v57 = vld [vmem:[#allocation79_spill] sm:$0xff] }
 0x233   : > { %v2204_v47 = vpack.c.bf16 %v3797_v48, %v3796_v40  ;;  %v876_v48 = vld [vmem:[%s873_s3 + $0x10] sm:$0xff] }
 0x234   : > { %2197 = vmatpush1.bf16.msra.mxu0 %v2196_v43  ;;  %v3799_v43 = vld [vmem:[#allocation78_spill] sm:$0xff] }
 0x235   : > { %2199 = vmatprep.subr.bf16.mxu0 %v2198_v53  ;;  %2223 = vmatpush3.bf16.msra.mxu1 %v2222_v50  ;;  %v2228_v63 = vpack.c.bf16 %v3799_v43, %v3798_v1  ;;  %v882_v1 = vld [vmem:[%s881_s29] sm:$0xff] }
 0x236   : > { %2224 = vmatprep.subr.bf16.mxu1 %v2613_v0 }
 0x238   : > { %2201 = vmatpush1.bf16.msra.mxu0 %v2200_v60 }
 0x239   : > { %2203 = vmatprep.subr.bf16.mxu0 %v2202_v61  ;;  %2226 = vmatpush3.bf16.msra.mxu1 %v2225_v44 }
 0x23a   : > { %2227 = vmatprep.subr.bf16.mxu1 %v2613_v0  ;;  %v875_v0 = vld [vmem:[%s873_s3 + $0x8] sm:$0xff] }
 0x23c   : > { %2205 = vmatpush1.bf16.msra.mxu0 %v2204_v47 }
 0x23d   : > { %2229 = vmatpush3.bf16.msra.mxu1 %v2228_v63 }
 0x23f   : > { %1112 = vmatmul.mubr.f32.vlgmr.msra.gmra.mrb[2].mxu0 %v2589_v52 }
 0x240   : > { %1997 = vmatmul.mubr.f32.vlgmr.msra.gmra.mrb[2].mxu1 %v2589_v52 }
 0x2f2   : > { %v951_v53 = vpop.f32.mrb[0].mxu0  ;;  %v1022_v50 = vpop.f32.mrb[0].mxu1 }
 0x2f3   : > { %v1026_v55 = vadd.f32 %v951_v53, %v874_v49  ;;  %v953_v46 = vpop.f32.mrb[1].mxu0  ;;  %v1963_v56 = vpop.f32.mrb[1].mxu1  ;;  %v1040_v51 = vadd.f32 %v3800_v57, %v1022_v50 }
 0x2f4   : > { %v1033_v60 = vadd.f32 %v953_v46, %v875_v0  ;;  %v883_v0 = vld [vmem:[%s881_s29 + $0x8] sm:$0xff] }
 0x2f5   : > { %v1776_v58 = vmul.f32 -1.442695, %v1026_v55 }
 0x2f6   : > { %v1777_v54 = vmul.f32 -1.442695, %v1033_v60 }
 0x2f7   : > { %2339 = vpow2.f32 %v1776_v58 }
 0x2f8   : > { %2341 = vpow2.f32 %v1777_v54 }
 0x301   : > { %v2340_v62 = vpop.eup %2339 }
 0x302   : > { %v1030_v61 = vadd.f32 1.0, %v2340_v62  ;;  %v2342_v44 = vpop.eup %2341 }
 0x303   : > { %v1037_v43 = vadd.f32 1.0, %v2342_v44 }
 0x304   : > { %2343 = vrcp.f32 %v1030_v61 }
 0x30e   : > { %v2344_v40 = vpop.eup %2343 }
 0x30f   : > { %v1041_v47 = vmul.f32 %v2344_v40, %v1040_v51 }
 0x311   : > { %v1042_v63 = vadd.f32 %v1041_v47, %v876_v48  ;;  %v3801_v48 = vld [vmem:[#allocation80_spill] sm:$0xff] }
 0x312   : > { %v1113_v49 = vpop.f32.mrb[2].mxu0 }
 0x313   : > { %2345 = vtanh.f32 %v1042_v63  ;;  %v1188_v53 = vadd.f32 %v1113_v49, %v882_v1  ;;  %v1115_v55 = vpop.f32.mrb[3].mxu0  ;;  %v1184_v46 = vpop.f32.mrb[2].mxu1  ;;  %v884_v63 = vld [vmem:[%s881_s29 + $0x10] sm:$0xff] }
 0x314   : > { %2347 = vrcp.f32 %v1037_v43  ;;  %v1998_v56 = vpop.f32.mrb[3].mxu1  ;;  %v1195_v60 = vadd.f32 %v1115_v55, %v883_v0  ;;  %v1202_v47 = vadd.f32 %v3801_v48, %v1184_v46  ;;  %v1388_v48 = vld [vmem:[%s3647_s12 + $0x78] sm:$0xff] (%p860_p2) }
 0x315   : > { %v1778_v58 = vmul.f32 -1.442695, %v1188_v53 }
 0x316   : > { %v1779_v61 = vmul.f32 -1.442695, %v1195_v60 }
 0x317   : > { %2349 = vpow2.f32 %v1778_v58 }
 0x318   : > { %2351 = vpow2.f32 %v1779_v61  ;;  %v1374_v61 = vld [vmem:[%s3647_s12 + $0x8] sm:$0xff] (%p860_p2) }
 0x31d   : > { %v2346_v50 = vpop.eup %2345 }
 0x31e   : > { %v1044_v54 = vsub.f32 %v2593_v59, %v2346_v50  ;;  %v2348_v62 = vpop.eup %2347 }
 0x320   : > { %v1045_v57 = vmul.f32 %v2348_v62, %v1044_v54  ;;  %v3804_v54 = vmov (%p860_p2), 0.0   ;;  %v1373_v62 = vld [vmem:[%s3647_s12] sm:$0xff] (%p860_p2) }
 0x321   : > { %v2350_v51 = vpop.eup %2349  ;;  %2003 = vmatprep.mubr.msk.f32.mxu1 (%p860_p2), %vm2617_vm2, %v3804_v54  ;;  %v2237_v2 = vpack.c.bf16 (%p860_p2), %v1374_v61, %v1373_v62  ;;  %2045 = vmatprep.mubr.msk.f32.mxu0 (%p860_p2), %vm2617_vm2, %v3804_v54 }
 0x322   : > { %v1046_v44 = vadd.f32 %v2346_v50, %v1045_v57   ;;  %v1192_v40 = vadd.f32 1.0, %v2350_v51  ;;  %v2352_v1 = vpop.eup %2351  ;;  %v2616_v50 = vmov (%p860_p2), 0.0|0.0   ;;  %v1209_v57 = vld [vmem:[#allocation15] sm:$0xff] (%p860_p2)  ;;  %v1372_v51 = vld [vmem:[%s3646_s11 + $0x78] sm:$0xff] (%p860_p2) }
 0x323   : > { %v1199_v53 = vadd.f32 1.0, %v2352_v1  ;;  %2230 = vmatprep.subr.bf16.mxu1 (%p860_p2), %v2616_v50  ;;  %2236 = vmatprep.subr.bf16.mxu0 (%p860_p2), %v2616_v50 }
 0x324   : > { %2353 = vrcp.f32 %v1192_v40  ;;  %2238 = vmatpush3.bf16.msra.mxu0 (%p860_p2), %v2237_v2  ;;  %v1387_v40 = vld [vmem:[%s3647_s12 + $0x70] sm:$0xff] (%p860_p2) }
 0x325   :  { %2239 = vmatprep.subr.bf16.mxu0 (%p860_p2), %v2616_v50 }
 0x328   :  { %2241 = vmatpush3.bf16.msra.mxu0 (%p860_p2), %v2240_v7  ;;  %v1571_v7 = vld [vmem:[#allocation18 + $0x10] sm:$0xff] (%p860_p2) }
 0x329   :  { %2242 = vmatprep.subr.bf16.mxu0 (%p860_p2), %v2616_v50  ;;  %v2288_v9 = vpack.c.bf16 (%p860_p2), %v1572_v8, %v1571_v7 }
 0x32c   :  { %2244 = vmatpush3.bf16.msra.mxu0 (%p860_p2), %v2243_v14  ;;  %v1576_v14 = vld [vmem:[#allocation18 + $0x38] sm:$0xff] (%p860_p2) }
 0x32d   :  { %2245 = vmatprep.subr.bf16.mxu0 (%p860_p2), %v2616_v50  ;;  %v2294_v15 = vpack.c.bf16 (%p860_p2), %v1576_v14, %v1575_v13 }
 0x32e   : > { %v2354_v43 = vpop.eup %2353 }
 0x32f   : > { %v1203_v49 = vmul.f32 %v2354_v43, %v1202_v47  ;;  %v2258_v47 = vpack.c.bf16 (%p860_p2), %v1388_v48, %v1387_v40  ;;  %v1790_v48 = vld [vmem:[#allocation4] ss:$0 sm:$0xff] (%p860_p2) }
 0x330   :  { %2247 = vmatpush3.bf16.msra.mxu0 (%p860_p2), %v2246_v20  ;;  %v1783_v20 = vld [vmem:[%s3649_s14] ss:$0 sm:$0xff] (%p860_p2) }
 0x331   : > { %v1204_v58 = vadd.f32 %v1203_v49, %v884_v63  ;;  %2248 = vmatprep.subr.bf16.mxu0 (%p860_p2), %v2616_v50 }
 0x333   : > { %2355 = vtanh.f32 %v1204_v58 }
 0x334   : > { %2357 = vrcp.f32 %v1199_v53  ;;  %2250 = vmatpush3.bf16.msra.mxu0 (%p860_p2), %v2249_v26 }
 0x335   :  { %2251 = vmatprep.subr.bf16.mxu0 (%p860_p2), %v2616_v50 }
 0x338   :  { %2253 = vmatpush3.bf16.msra.mxu0 (%p860_p2), %v2252_v32 }
 0x339   :  { %2254 = vmatprep.subr.bf16.mxu0 (%p860_p2), %v2616_v50 }
 0x33c   :  { %2256 = vmatpush3.bf16.msra.mxu0 (%p860_p2), %v2255_v38 }
 0x33d   : > { %v2356_v55 = vpop.eup %2355  ;;  %2257 = vmatprep.subr.bf16.mxu0 (%p860_p2), %v2616_v50 }
 0x33e   : > { %v1206_v59 = vsub.f32 %v2589_v52, %v2356_v55  ;;  %v2358_v56 = vpop.eup %2357  ;;  %862 = sbr.rel (!%p860_p2) target bundleno = 509 (0x1fd), region = 153 }
 0x340   : > { %v1207_v0 = vmul.f32 %v2358_v56, %v1206_v59  ;;  %v3803_v59 = vmov %v1046_v44  ;;  %2259 = vmatpush3.bf16.msra.mxu0 (%p860_p2), %v2258_v47 }
 0x341   :  { %2284 = vmatprep.subr.bf16.mxu0 (%p860_p2), %v2616_v50  ;;  %v1782_v59 = vld [vmem:[%s3648_s13] ss:$0 sm:$0xff] (%p860_p2) }
 0x342   : > { %v1208_v60 = vadd.f32 %v2356_v55, %v1207_v0  }
 0x344   : > { %v3802_v52 = vmov %v1208_v60  ;;  %v2231_v46 = vpack.c.bf16 (%p860_p2), %v1208_v60, %v1046_v44 }
 0x345   :  { %v1371_v52 = vld [vmem:[%s3646_s11 + $0x70] sm:$0xff] }
 0x346   :  { %2232 = vmatpush3.bf16.msra.mxu1 %v2231_v46  ;;  %v2282_v44 = vpack.c.bf16 %v1372_v51, %v1371_v52  ;;  %v1789_v52 = vld [vmem:[%s3655_s20] ss:$0 sm:$0xff] }
 0x347   :  { %2233 = vmatprep.subr.bf16.mxu1 %v2616_v50 }
 0x349   :  { %2004 = vmatmul.mubr.msk.f32.vlgmr.msra.gmra.mrb[0].mxu1 %vm216_vm0, %v1209_v57 }
 0x34a   :  { %2235 = vmatpush3.bf16.msra.mxu1 %v2231_v46  ;;  %2010 = vmatprep.mubr.msk.f32.mxu1 %vm2617_vm2, %v3804_v54 }
 0x34b   :  { %2260 = vmatprep.subr.bf16.mxu1 %v2616_v50 }
 0x34d   :  { %2011 = vmatmul.mubr.msk.f32.vlgmr.msra.gmra.mrb[2].mxu1 %vm216_vm0, %v1283_v10  ;;  %v1573_v10 = vld [vmem:[#allocation18 + $0x20] sm:$0xff] }
 0x34e   :  { %2262 = vmatpush3.bf16.msra.mxu1 %v2261_v11  ;;  %2080 = vmatprep.mubr.msk.f32.mxu1 %vm2617_vm2, %v3804_v54  ;;  %v1574_v11 = vld [vmem:[#allocation18 + $0x28] sm:$0xff] }
 0x34f   :  { %2263 = vmatprep.subr.bf16.mxu1 %v2616_v50  ;;  %v2291_v12 = vpack.c.bf16 %v1574_v11, %v1573_v10 }
 0x352   :  { %2265 = vmatpush3.bf16.msra.mxu1 %v2264_v17 }
 0x353   :  { %2266 = vmatprep.subr.bf16.mxu1 %v2616_v50 }
 0x356   :  { %2268 = vmatpush3.bf16.msra.mxu1 %v2267_v23 }
 0x357   :  { %2269 = vmatprep.subr.bf16.mxu1 %v2616_v50 }
 0x35a   :  { %2271 = vmatpush3.bf16.msra.mxu1 %v2270_v29 }
 0x35b   :  { %2272 = vmatprep.subr.bf16.mxu1 %v2616_v50 }
 0x35e   :  { %2274 = vmatpush3.bf16.msra.mxu1 %v2273_v35 }
 0x35f   :  { %2275 = vmatprep.subr.bf16.mxu1 %v2616_v50 }
 0x362   :  { %2277 = vmatpush3.bf16.msra.mxu1 %v2276_v39  ;;  %v1787_v39 = vld [vmem:[%s3653_s18] ss:$0 sm:$0xff] }
 0x363   :  { %2278 = vmatprep.subr.bf16.mxu1 %v2616_v50 }
 0x366   :  { %2280 = vmatpush3.bf16.msra.mxu1 %v2279_v45 }
 0x367   :  { %2281 = vmatprep.subr.bf16.mxu1 %v2616_v50 }
 0x36a   :  { %2283 = vmatpush3.bf16.msra.mxu1 %v2282_v44 }
 0x41c   :  { %v1279_v1 = vpop.f32.mrb[0].mxu1 }
 0x41d   :  { %v2005_v43 = vpop.f32.mrb[1].mxu1  ;;  %2081 = vmatmul.mubr.f32.vlgmr.msra.gmra.mrb[4].mxu1 %v1279_v1 }
 0x420   :  { %v1353_v63 = vpop.f32.mrb[2].mxu1 }
 0x421   :  { %v2012_v49 = vpop.f32.mrb[3].mxu1  ;;  %2046 = vmatmul.mubr.f32.vlgmr.msra.gmra.mrb[0].mxu0 %v1353_v63 }
 0x422   :  { %2099 = vmatprep.mubr.msk.f32.mxu0 %vm2617_vm2, %v3804_v54  ;;  %2286 = vmatpush3.bf16.msra.mxu0 %v2285_v6 }
 0x423   :  { %2287 = vmatprep.subr.bf16.mxu0 %v2616_v50 }
 0x426   :  { %2289 = vmatpush3.bf16.msra.mxu0 %v2288_v9 }
 0x427   :  { %2290 = vmatprep.subr.bf16.mxu0 %v2616_v50 }
 0x42a   :  { %2292 = vmatpush3.bf16.msra.mxu0 %v2291_v12 }
 0x42b   :  { %2293 = vmatprep.subr.bf16.mxu0 %v2616_v50 }
 0x42e   :  { %2295 = vmatpush3.bf16.msra.mxu0 %v2294_v15 }
 0x4f0   :  { %v1525_v53 = vpop.f32.mrb[4].mxu1 }
 0x4f1   :  { %v2082_v58 = vpop.f32.mrb[5].mxu1 }
 0x4f4   :  { %v1455_v55 = vpop.f32.mrb[0].mxu0 }
 0x4f5   :  { %v1526_v56 = vadd.f32 %v1525_v53, %v1455_v55  ;;  %v2047_v0 = vpop.f32.mrb[1].mxu0 }
 0x4f7   :  { %v1536_v60 = vadd.f32 %v1782_v59, %v1526_v56 }
 0x4f9   :  { %v1537_v46 = vmax.f32 %v1536_v60, 0.0 }
 0x4fb   :  { %v1541_v62 = vsel %vm1540_vm3, %v1537_v46, 0.0 }
 0x4fc   :  { %1542 = vadd.xlane.f32.xlu0 %v1541_v62 }
 0x589   :  { %v1543_v61 = vpop.xlane.xlu0 %1542 }
 0x58a   :  { %v1545_v57 = vmul.f32 0.015625, %v1543_v61 }
 0x58c   :  { %v1546_v2 = vsub.f32 %v1537_v46, %v1545_v57 }
 0x58e   :  { %v1547_v3 = vmul.f32 %v1546_v2, %v1546_v2 }
 0x590   :  { %v1548_v54 = vsel %vm1540_vm3, %v1547_v3, 0.0 }
 0x591   :  { %1549 = vadd.xlane.f32.xlu0 %v1548_v54 }
 0x61e   :  { %v1550_v16 = vpop.xlane.xlu0 %1549 }
 0x61f   :  { %v1551_v17 = vmul.f32 0.015625, %v1550_v16 }
 0x621   :  { %v1552_v18 = vadd.f32 1e-05, %v1551_v17 }
 0x623   :  { %2359 = vrsqrt.f32 %v1552_v18 }
 0x62d   :  { %v2360_v19 = vpop.eup %2359 }
 0x62e   :  { %v1554_v21 = vmul.f32 %v2360_v19, %v1546_v2 }
 0x630   :  { %v1561_v23 = vmul.f32 %v1783_v20, %v1554_v21 }
 0x632   :  { %v1568_v50 = vadd.f32 %v1784_v22, %v1561_v23 }
 0x634   :  { %2100 = vmatmul.mubr.msk.f32.vlgmr.msra.gmra.mrb[2].mxu0 %vm1540_vm3, %v1568_v50 }
 0x707   :  { %v1653_v25 = vpop.f32.mrb[2].mxu0 }
 0x708   :  { %v1654_v26 = vadd.f32 %v1785_v24, %v1653_v25  ;;  %v2101_v27 = vpop.f32.mrb[3].mxu0 }
 0x70a   :  { %v1657_v28 = vmax.f32 %v1654_v26, 0.0 }
 0x70c   :  { %v1660_v29 = vsel %vm1540_vm3, %v1657_v28, 0.0 }
 0x70d   :  { %1661 = vadd.xlane.f32.xlu1 %v1660_v29 }
 0x79a   :  { %v1662_v30 = vpop.xlane.xlu1 %1661 }
 0x79b   :  { %v1663_v31 = vmul.f32 0.015625, %v1662_v30 }
 0x79d   :  { %v1664_v32 = vsub.f32 %v1657_v28, %v1663_v31 }
 0x79f   :  { %v1665_v33 = vmul.f32 %v1664_v32, %v1664_v32 }
 0x7a1   :  { %v1666_v34 = vsel %vm1540_vm3, %v1665_v33, 0.0 }
 0x7a2   :  { %1667 = vadd.xlane.f32.xlu1 %v1666_v34 }
 0x82f   :  { %v1668_v35 = vpop.xlane.xlu1 %1667 }
 0x830   :  { %v1669_v36 = vmul.f32 0.015625, %v1668_v35 }
 0x832   :  { %v1670_v37 = vadd.f32 1e-05, %v1669_v36 }
 0x834   :  { %2361 = vrsqrt.f32 %v1670_v37 }
 0x83e   :  { %v2362_v38 = vpop.eup %2361 }
 0x83f   :  { %v1672_v41 = vmul.f32 %v2362_v38, %v1664_v32 }
 0x841   :  { %v1679_v45 = vmul.f32 %v1787_v39, %v1672_v41 }
 0x843   :  { %v1686_v51 = vadd.f32 %v1788_v42, %v1679_v45 }
 0x845   :  { %v1694_v44 = vmul.f32 %v1789_v52, %v1686_v51 }
 0x847   :  { %v1695_v40 = vsel %vm1540_vm3, %v1694_v44, 0.0 }
 0x848   :  { %1696 = vadd.xlane.f32.xlu0 %v1695_v40 }
 0x8d5   :  { %v1697_v47 = vpop.xlane.xlu0 %1696 }
 0x8d6   :  { %v1705_v1 = vadd.f32 %v1790_v48, %v1697_v47 }
 0x8d8   :  { %v1791_v43 = vmul.f32 -1.442695, %v1705_v1 }
 0x8da   :  { %2363 = vpow2.f32 %v1791_v43 }
 0x8e4   :  { %v2364_v63 = vpop.eup %2363 }
 0x8e5   :  { %v1709_v49 = vadd.f32 1.0, %v2364_v63 }
 0x8e7   :  { %2365 = vrcp.f32 %v1709_v49 }
 0x8f1   :  { %v2366_v53 = vpop.eup %2365 }
 0x8f2   :  { %1713 = vst.msk [vmem:[%s3657_s22] sm:$0xff] %vm1712_vm4, %v2366_v53 }
 0x8f3   :  { %1718 = vsyncpa [#allocation6], 1 }
 0x8f4   :  { %1719 = vsyncpa [#allocation8], 1 }
 0x8f5   :  { %1720 = vsyncpa [#allocation11], 1 }
 0x8f6   :  { %1721 = vsyncpa [#allocation14], 1 }
 0x8f7   :  { %1722 = vsyncpa [#allocation17], 1 }

</bundles_post_ra>
